<compile_context>
chip_gen: v5e
topology: v5e:2x2
jax: 0.10.0
libtpu: 0.0.40
codegen_flags: <defaults>
</compile_context>

<pallas_src>
import functools
import math

import jax
import jax.numpy as jnp
from jax import lax
from jax.experimental import pallas as pl
from jax.experimental.pallas import tpu as pltpu


# 32 MiB scoped VMEM: plenty for these tiles, safe headroom on v7x (64 MiB/TC).
VMEM_LIMIT_BYTES = 32 * 1024 * 1024


def _pick_tile(dim, targets):
    """Largest target tile that evenly divides `dim`; else the full dim."""
    for t in targets:
        if dim >= t and dim % t == 0:
            return t
    return dim


# ----------------------------------------------------------------------------
# General tiled linear: y = x @ w + b   (frontend, final vocab projection)
# ----------------------------------------------------------------------------
def _linear_kernel(x_ref, w_ref, b_ref, o_ref, acc_ref):
    k = pl.program_id(2)

    @pl.when(k == 0)
    def _():
        acc_ref[...] = jnp.zeros_like(acc_ref)

    acc_ref[...] += jnp.dot(
        x_ref[...].astype(jnp.bfloat16),
        w_ref[...],
        preferred_element_type=jnp.float32,
    )

    @pl.when(k == pl.num_programs(2) - 1)
    def _():
        o_ref[...] = (acc_ref[...] + b_ref[...]).astype(o_ref.dtype)


def linear2d(x2d, w, b):
    M, K = x2d.shape
    N = w.shape[1]
    tm = _pick_tile(M, (256, 128, 64, 32, 16, 8))
    tn = _pick_tile(N, (512, 256, 128))
    tk = _pick_tile(K, (512, 256, 128))
    grid = (M // tm, N // tn, K // tk)

    return pl.pallas_call(
        _linear_kernel,
        grid_spec=pltpu.PrefetchScalarGridSpec(
            num_scalar_prefetch=0,
            grid=grid,
            in_specs=[
                pl.BlockSpec((tm, tk), lambda i, j, k: (i, k)),
                pl.BlockSpec((tk, tn), lambda i, j, k: (k, j)),
                pl.BlockSpec((1, tn), lambda i, j, k: (0, j)),
            ],
            out_specs=pl.BlockSpec((tm, tn), lambda i, j, k: (i, j)),
            scratch_shapes=[pltpu.VMEM((tm, tn), jnp.float32)],
        ),
        out_shape=jax.ShapeDtypeStruct((M, N), jnp.float32),
        compiler_params=pltpu.CompilerParams(
            dimension_semantics=("parallel", "parallel", "arbitrary"),
            vmem_limit_bytes=VMEM_LIMIT_BYTES,
        ),
    )(x2d, w, b.reshape(1, N))


def linear3d(x3d, w, b):
    B, T, K = x3d.shape
    N = w.shape[1]
    return linear2d(x3d.reshape(B * T, K), w, b).reshape(B, T, N)


# ----------------------------------------------------------------------------
# Fused self-attention block:
#   x -> QKV matmul -> masked softmax(q k^T / sqrt(D)) v -> Wo + bias + x
# Masks rebuilt in-kernel from SMEM-prefetched lengths (len mask) and/or
# iota compares (causal mask).
# ----------------------------------------------------------------------------
def _self_attn_kernel(lens_ref, x_ref, wqkv_ref, bqkv_ref, wo_ref, bo_ref,
                      o_ref, *, scale, causal, use_len):
    b = pl.program_id(0)
    D = wo_ref.shape[0]

    x = x_ref[0]                                              # (L, D) f32
    qkv = jnp.dot(x.astype(jnp.bfloat16), wqkv_ref[...],
                  preferred_element_type=jnp.float32) + bqkv_ref[...]

    q = (qkv[:, :D] * scale).astype(jnp.bfloat16)             # scale folded in
    k = qkv[:, D:2 * D].astype(jnp.bfloat16)
    v = qkv[:, 2 * D:].astype(jnp.bfloat16)

    # scores = q @ k^T, contracting last dims (no explicit transpose/relayout).
    s = lax.dot_general(q, k, (((1,), (1,)), ((), ())),
                        preferred_element_type=jnp.float32)   # (L, L) f32
    L = s.shape[0]

    neg = jnp.float32(-1e9)
    key_idx = lax.broadcasted_iota(jnp.int32, (L, L), 1)
    if use_len:                   # PyTorch get_len_mask: True (masked) at key >= len
        s = jnp.where(key_idx >= lens_ref[b], neg, s)
    if causal:                    # PyTorch get_subsequent_mask (triu, diag=1)
        qry_idx = lax.broadcasted_iota(jnp.int32, (L, L), 0)
        s = jnp.where(key_idx > qry_idx, neg, s)

    m = jnp.max(s, axis=-1, keepdims=True)
    p = jnp.exp(s - m)
    denom = jnp.sum(p, axis=-1, keepdims=True)

    ctx = lax.dot_general(p.astype(jnp.bfloat16), v, (((1,), (0,)), ((), ())),
                          preferred_element_type=jnp.float32)  # (L, D)
    ctx = ctx * pl.reciprocal(denom, approx=True)

    y = jnp.dot(ctx.astype(jnp.bfloat16), wo_ref[...],
                preferred_element_type=jnp.float32) + bo_ref[...]
    o_ref[0] = (y + x).astype(o_ref.dtype)                    # fused residual


def self_attn_block(x, wqkv, bqkv, wo, bo, lens, scale, *, causal, use_len):
    B, L, D = x.shape
    kern = functools.partial(_self_attn_kernel, scale=scale, causal=causal,
                             use_len=use_len)
    return pl.pallas_call(
        kern,
        grid_spec=pltpu.PrefetchScalarGridSpec(
            num_scalar_prefetch=1,                 # lens -> SMEM
            grid=(B,),
            in_specs=[
                pl.BlockSpec((1, L, D), lambda b, lens: (b, 0, 0)),
                pl.BlockSpec((D, 3 * D), lambda b, lens: (0, 0)),
                pl.BlockSpec((1, 3 * D), lambda b, lens: (0, 0)),
                pl.BlockSpec((D, D), lambda b, lens: (0, 0)),
                pl.BlockSpec((1, D), lambda b, lens: (0, 0)),
            ],
            out_specs=pl.BlockSpec((1, L, D), lambda b, lens: (b, 0, 0)),
        ),
        out_shape=jax.ShapeDtypeStruct((B, L, D), jnp.float32),
        compiler_params=pltpu.CompilerParams(
            dimension_semantics=("parallel",),
            vmem_limit_bytes=VMEM_LIMIT_BYTES,
        ),
    )(lens, x, wqkv, bqkv.reshape(1, 3 * D), wo, bo.reshape(1, D))


# ----------------------------------------------------------------------------
# Fused cross-attention block:
#   q = xq @ Wq + bq ; kv = xkv @ Wkv + bkv ; masked attn ; Wo + bias + xq
# ----------------------------------------------------------------------------
def _cross_attn_kernel(lens_ref, xq_ref, xkv_ref, wq_ref, bq_ref, wkv_ref,
                       bkv_ref, wo_ref, bo_ref, o_ref, *, scale):
    b = pl.program_id(0)
    D = wo_ref.shape[0]

    xq = xq_ref[0]                                             # (Lq, D) f32
    xkv = xkv_ref[0]                                           # (Lk, D) f32

    q = jnp.dot(xq.astype(jnp.bfloat16), wq_ref[...],
                preferred_element_type=jnp.float32) + bq_ref[...]
    kv = jnp.dot(xkv.astype(jnp.bfloat16), wkv_ref[...],
                 preferred_element_type=jnp.float32) + bkv_ref[...]

    qb = (q * scale).astype(jnp.bfloat16)
    kb = kv[:, :D].astype(jnp.bfloat16)
    vb = kv[:, D:].astype(jnp.bfloat16)

    s = lax.dot_general(qb, kb, (((1,), (1,)), ((), ())),
                        preferred_element_type=jnp.float32)    # (Lq, Lk) f32
    Lq, Lk = s.shape

    # PyTorch get_enc_dec_mask: True (masked) at encoder key >= feat_len.
    key_idx = lax.broadcasted_iota(jnp.int32, (Lq, Lk), 1)
    s = jnp.where(key_idx >= lens_ref[b], jnp.float32(-1e9), s)

    m = jnp.max(s, axis=-1, keepdims=True)
    p = jnp.exp(s - m)
    denom = jnp.sum(p, axis=-1, keepdims=True)

    ctx = lax.dot_general(p.astype(jnp.bfloat16), vb, (((1,), (0,)), ((), ())),
                          preferred_element_type=jnp.float32)  # (Lq, D)
    ctx = ctx * pl.reciprocal(denom, approx=True)

    y = jnp.dot(ctx.astype(jnp.bfloat16), wo_ref[...],
                preferred_element_type=jnp.float32) + bo_ref[...]
    o_ref[0] = (y + xq).astype(o_ref.dtype)


def cross_attn_block(xq, xkv, wq, bq, wkv, bkv, wo, bo, lens, scale):
    B, Lq, D = xq.shape
    Lk = xkv.shape[1]
    kern = functools.partial(_cross_attn_kernel, scale=scale)
    return pl.pallas_call(
        kern,
        grid_spec=pltpu.PrefetchScalarGridSpec(
            num_scalar_prefetch=1,
            grid=(B,),
            in_specs=[
                pl.BlockSpec((1, Lq, D), lambda b, lens: (b, 0, 0)),
                pl.BlockSpec((1, Lk, D), lambda b, lens: (b, 0, 0)),
                pl.BlockSpec((D, D), lambda b, lens: (0, 0)),
                pl.BlockSpec((1, D), lambda b, lens: (0, 0)),
                pl.BlockSpec((D, 2 * D), lambda b, lens: (0, 0)),
                pl.BlockSpec((1, 2 * D), lambda b, lens: (0, 0)),
                pl.BlockSpec((D, D), lambda b, lens: (0, 0)),
                pl.BlockSpec((1, D), lambda b, lens: (0, 0)),
            ],
            out_specs=pl.BlockSpec((1, Lq, D), lambda b, lens: (b, 0, 0)),
        ),
        out_shape=jax.ShapeDtypeStruct((B, Lq, D), jnp.float32),
        compiler_params=pltpu.CompilerParams(
            dimension_semantics=("parallel",),
            vmem_limit_bytes=VMEM_LIMIT_BYTES,
        ),
    )(lens, xq, xkv, wq, bq.reshape(1, D), wkv, bkv.reshape(1, 2 * D),
      wo, bo.reshape(1, D))


# ----------------------------------------------------------------------------
# Fused position-wise FFN block: relu(x @ W1 + b1) @ W2 + b2 + x
# ----------------------------------------------------------------------------
def _ffn_kernel(x_ref, w1_ref, b1_ref, w2_ref, b2_ref, o_ref):
    x = x_ref[...]                                             # (tm, D) f32
    h = jnp.dot(x.astype(jnp.bfloat16), w1_ref[...],
                preferred_element_type=jnp.float32) + b1_ref[...]
    h = jnp.maximum(h, 0.0)
    y = jnp.dot(h.astype(jnp.bfloat16), w2_ref[...],
                preferred_element_type=jnp.float32) + b2_ref[...]
    o_ref[...] = (y + x).astype(o_ref.dtype)                   # fused residual


def ffn_block(x3d, w1, b1, w2, b2):
    B, T, D = x3d.shape
    d_ff = w1.shape[1]
    M = B * T
    tm = _pick_tile(M, (512, 256, 128, 64, 32, 16, 8))
    y = pl.pallas_call(
        _ffn_kernel,
        grid_spec=pltpu.PrefetchScalarGridSpec(
            num_scalar_prefetch=0,
            grid=(M // tm,),
            in_specs=[
                pl.BlockSpec((tm, D), lambda i: (i, 0)),
                pl.BlockSpec((D, d_ff), lambda i: (0, 0)),
                pl.BlockSpec((1, d_ff), lambda i: (0, 0)),
                pl.BlockSpec((d_ff, D), lambda i: (0, 0)),
                pl.BlockSpec((1, D), lambda i: (0, 0)),
            ],
            out_specs=pl.BlockSpec((tm, D), lambda i: (i, 0)),
        ),
        out_shape=jax.ShapeDtypeStruct((M, D), jnp.float32),
        compiler_params=pltpu.CompilerParams(
            dimension_semantics=("parallel",),
            vmem_limit_bytes=VMEM_LIMIT_BYTES,
        ),
    )(x3d.reshape(M, D), w1, b1.reshape(1, d_ff), w2, b2.reshape(1, D))
    return y.reshape(B, T, D)


# ----------------------------------------------------------------------------
# Parameters (deterministic synthetic init; weights bf16, biases f32)
# ----------------------------------------------------------------------------
def init_params(key, f_in, d_model, d_ff, vocab):
    D = d_model
    w_shapes = {
        "W_f": (f_in, D),
        "enc_Wqkv": (D, 3 * D), "enc_Wo": (D, D),
        "enc_W1": (D, d_ff), "enc_W2": (d_ff, D),
        "dec_Wqkv1": (D, 3 * D), "dec_Wo1": (D, D),
        "dec_Wq2": (D, D), "dec_Wkv2": (D, 2 * D), "dec_Wo2": (D, D),
        "dec_W1": (D, d_ff), "dec_W2": (d_ff, D),
        "W_out": (D, vocab),
    }
    bias_names = {
        "W_f": "b_f", "enc_Wqkv": "enc_bqkv", "enc_Wo": "enc_bo",
        "enc_W1": "enc_b1", "enc_W2": "enc_b2",
        "dec_Wqkv1": "dec_bqkv1", "dec_Wo1": "dec_bo1",
        "dec_Wq2": "dec_bq2", "dec_Wkv2": "dec_bkv2", "dec_Wo2": "dec_bo2",
        "dec_W1": "dec_b1", "dec_W2": "dec_b2", "W_out": "b_out",
    }
    params = {}
    keys = jax.random.split(key, len(w_shapes) + 1)
    for (name, shape), k in zip(w_shapes.items(), keys[:-1]):
        params[name] = (0.05 * jax.random.normal(k, shape, dtype=jnp.float32)
                        ).astype(jnp.bfloat16)
        params[bias_names[name]] = jnp.zeros((shape[1],), jnp.float32)
    params["dec_emb"] = 0.05 * jax.random.normal(keys[-1], (vocab, D),
                                                 dtype=jnp.float32)
    return params


# ----------------------------------------------------------------------------
# Forward pass (mirrors Transformer.forward)
# ----------------------------------------------------------------------------
def transformer_forward(params, X, X_lens, labels):
    X_lens = X_lens.astype(jnp.int32)
    labels = labels.astype(jnp.int32)
    D = params["enc_Wo"].shape[0]
    scale = 1.0 / math.sqrt(D)

    # frontend
    out = linear3d(X, params["W_f"], params["b_f"])                    # (B, T, D)

    # ------------- encoder: self-attention (len mask) + FFN -------------
    h = self_attn_block(out, params["enc_Wqkv"], params["enc_bqkv"],
                        params["enc_Wo"], params["enc_bo"],
                        lens=X_lens, scale=scale, causal=False, use_len=True)
    enc_out = ffn_block(h, params["enc_W1"], params["enc_b1"],
                        params["enc_W2"], params["enc_b2"])

    # ----------------------------- decoder -------------------------------
    # token embedding gather kept in XLA (no tiled-Pallas win at this scale).
    emb = jnp.take(params["dec_emb"], labels, axis=0)                  # (B, L, D)

    # causal self-attention (subsequent mask)
    h = self_attn_block(emb, params["dec_Wqkv1"], params["dec_bqkv1"],
                        params["dec_Wo1"], params["dec_bo1"],
                        lens=X_lens, scale=scale, causal=True, use_len=False)

    # encoder-decoder cross-attention (len mask on encoder keys)
    h = cross_attn_block(h, enc_out,
                         params["dec_Wq2"], params["dec_bq2"],
                         params["dec_Wkv2"], params["dec_bkv2"],
                         params["dec_Wo2"], params["dec_bo2"],
                         lens=X_lens, scale=scale)

    dec_out = ffn_block(h, params["dec_W1"], params["dec_b1"],
                        params["dec_W2"], params["dec_b2"])

    # final nn.Linear(dec_out_dim, vocab)
    logits = linear3d(dec_out, params["W_out"], params["b_out"])       # (B, L, V)
    return logits


# ----------------------------------------------------------------------------
if __name__ == "__main__":
    B, T, F_IN = 2, 16, 128      # batch, max feature frames, input feature dim
    D, D_FF = 128, 256           # model dim (== dec_out_dim), FFN hidden
    L, VOCAB = 8, 256            # label length, vocabulary size

    root = jax.random.PRNGKey(0)
    k_par, k_x, k_lab = jax.random.split(root, 3)

    params = init_params(k_par, F_IN, D, D_FF, VOCAB)
    X = jax.random.normal(k_x, (B, T, F_IN), dtype=jnp.float32)
    X_lens = jnp.array([T, 10], dtype=jnp.int32)
    labels = jax.random.randint(k_lab, (B, L), 0, VOCAB, dtype=jnp.int32)

    logits = jax.jit(transformer_forward)(params, X, X_lens, labels)
    logits = jax.block_until_ready(logits)
    assert logits.shape == (B, L, VOCAB)
    assert bool(jnp.all(jnp.isfinite(logits)))
    print("KERNEL_OK")
</pallas_src>

<mosaic_0001>
module attributes {stable_mosaic.version = 11 : i64} {
  func.func @_ffn_kernel(%arg0: i32, %arg1: memref<32x128xf32, #tpu.memory_space<vmem>>, %arg2: memref<128x256xbf16, #tpu.memory_space<vmem>>, %arg3: memref<1x256xf32, #tpu.memory_space<vmem>>, %arg4: memref<256x128xbf16, #tpu.memory_space<vmem>>, %arg5: memref<1x128xf32, #tpu.memory_space<vmem>>, %arg6: memref<32x128xf32, #tpu.memory_space<vmem>>) attributes {dimension_semantics = [#tpu.dimension_semantics<parallel>], iteration_bounds = array<i64: 1>, scalar_prefetch = 0 : i64, scratch_operands = 0 : i64, tpu.core_type = #tpu.core_type<tc>, window_params = [{transform_indices = @transform_0, window_bounds = array<i64: 32, 128>}, {pipeline_mode = #tpu.pipeline_mode<synchronous>, transform_indices = @transform_1, window_bounds = array<i64: 128, 256>}, {pipeline_mode = #tpu.pipeline_mode<synchronous>, transform_indices = @transform_2, window_bounds = array<i64: 1, 256>}, {pipeline_mode = #tpu.pipeline_mode<synchronous>, transform_indices = @transform_3, window_bounds = array<i64: 256, 128>}, {pipeline_mode = #tpu.pipeline_mode<synchronous>, transform_indices = @transform_4, window_bounds = array<i64: 1, 128>}, {transform_indices = @transform_5, window_bounds = array<i64: 32, 128>}]} {
    %c0 = arith.constant 0 : index
    %c0_0 = arith.constant 0 : index
    %0 = vector.load %arg1[%c0, %c0_0] : memref<32x128xf32, #tpu.memory_space<vmem>>, vector<32x128xf32>
    %1 = arith.truncf %0 : vector<32x128xf32> to vector<32x128xbf16>
    %c0_1 = arith.constant 0 : index
    %c0_2 = arith.constant 0 : index
    %2 = vector.load %arg2[%c0_1, %c0_2] : memref<128x256xbf16, #tpu.memory_space<vmem>>, vector<128x256xbf16>
    %cst = arith.constant dense<0.000000e+00> : vector<32x256xf32>
    %3 = tpu.matmul %1, %2, %cst {dimension_numbers = #tpu.dot_dimension_numbers<[1], [0], [0], [1], [0, 0, 1, 1], [], []>} : vector<32x128xbf16>, vector<128x256xbf16>, vector<32x256xf32> -> vector<32x256xf32>
    %c0_3 = arith.constant 0 : index
    %c0_4 = arith.constant 0 : index
    %4 = vector.load %arg3[%c0_3, %c0_4] : memref<1x256xf32, #tpu.memory_space<vmem>>, vector<1x256xf32>
    %5 = vector.broadcast %4 : vector<1x256xf32> to vector<32x256xf32>
    %6 = arith.addf %3, %5 : vector<32x256xf32>
    %cst_5 = arith.constant 0.000000e+00 : f32
    %7 = vector.broadcast %cst_5 : f32 to vector<32x256xf32>
    %8 = arith.maximumf %6, %7 : vector<32x256xf32>
    %9 = arith.truncf %8 : vector<32x256xf32> to vector<32x256xbf16>
    %c0_6 = arith.constant 0 : index
    %c0_7 = arith.constant 0 : index
    %10 = vector.load %arg4[%c0_6, %c0_7] : memref<256x128xbf16, #tpu.memory_space<vmem>>, vector<256x128xbf16>
    %cst_8 = arith.constant dense<0.000000e+00> : vector<32x128xf32>
    %11 = tpu.matmul %9, %10, %cst_8 {dimension_numbers = #tpu.dot_dimension_numbers<[1], [0], [0], [1], [0, 0, 1, 1], [], []>} : vector<32x256xbf16>, vector<256x128xbf16>, vector<32x128xf32> -> vector<32x128xf32>
    %c0_9 = arith.constant 0 : index
    %c0_10 = arith.constant 0 : index
    %12 = vector.load %arg5[%c0_9, %c0_10] : memref<1x128xf32, #tpu.memory_space<vmem>>, vector<1x128xf32>
    %13 = vector.broadcast %12 : vector<1x128xf32> to vector<32x128xf32>
    %14 = arith.addf %11, %13 : vector<32x128xf32>
    %15 = arith.addf %14, %0 : vector<32x128xf32>
    %c0_11 = arith.constant 0 : index
    %c0_12 = arith.constant 0 : index
    %16 = vector.load %arg6[%c0_11, %c0_12] : memref<32x128xf32, #tpu.memory_space<vmem>>, vector<32x128xf32>
    tpu.vector_store %arg6[%c0_11, %c0_12], %15 {strides = array<i32>} : memref<32x128xf32, #tpu.memory_space<vmem>>, vector<32x128xf32>,
    return
  }
  func.func @transform_0(%arg0: i32) -> (i32, i32) {
    %c0_i32 = arith.constant 0 : i32
    %c0_i32_0 = arith.constant 0 : i32
    return %arg0, %c0_i32 : i32, i32
  }
  func.func @transform_1(%arg0: i32) -> (i32, i32) {
    %c0_i32 = arith.constant 0 : i32
    %c0_i32_0 = arith.constant 0 : i32
    %c0_i32_1 = arith.constant 0 : i32
    return %c0_i32, %c0_i32_0 : i32, i32
  }
  func.func @transform_2(%arg0: i32) -> (i32, i32) {
    %c0_i32 = arith.constant 0 : i32
    %c0_i32_0 = arith.constant 0 : i32
    %c0_i32_1 = arith.constant 0 : i32
    return %c0_i32, %c0_i32_0 : i32, i32
  }
  func.func @transform_3(%arg0: i32) -> (i32, i32) {
    %c0_i32 = arith.constant 0 : i32
    %c0_i32_0 = arith.constant 0 : i32
    %c0_i32_1 = arith.constant 0 : i32
    return %c0_i32, %c0_i32_0 : i32, i32
  }
  func.func @transform_4(%arg0: i32) -> (i32, i32) {
    %c0_i32 = arith.constant 0 : i32
    %c0_i32_0 = arith.constant 0 : i32
    %c0_i32_1 = arith.constant 0 : i32
    return %c0_i32, %c0_i32_0 : i32, i32
  }
  func.func @transform_5(%arg0: i32) -> (i32, i32) {
    %c0_i32 = arith.constant 0 : i32
    %c0_i32_0 = arith.constant 0 : i32
    return %arg0, %c0_i32 : i32, i32
  }
}

module attributes {stable_mosaic.version = 11 : i64} {
  func.func @_self_attn_kernel(%arg0: i32, %arg1: memref<2xi32, #tpu.memory_space<smem>>, %arg2: memref<1x16x128xf32, #tpu.memory_space<vmem>>, %arg3: memref<128x384xbf16, #tpu.memory_space<vmem>>, %arg4: memref<1x384xf32, #tpu.memory_space<vmem>>, %arg5: memref<128x128xbf16, #tpu.memory_space<vmem>>, %arg6: memref<1x128xf32, #tpu.memory_space<vmem>>, %arg7: memref<1x16x128xf32, #tpu.memory_space<vmem>>) attributes {dimension_semantics = [#tpu.dimension_semantics<parallel>], iteration_bounds = array<i64: 2>, scalar_prefetch = 1 : i64, scratch_operands = 0 : i64, tpu.core_type = #tpu.core_type<tc>, window_params = [{transform_indices = @transform_0, window_bounds = array<i64: 1, 16, 128>}, {pipeline_mode = #tpu.pipeline_mode<synchronous>, transform_indices = @transform_1, window_bounds = array<i64: 128, 384>}, {pipeline_mode = #tpu.pipeline_mode<synchronous>, transform_indices = @transform_2, window_bounds = array<i64: 1, 384>}, {pipeline_mode = #tpu.pipeline_mode<synchronous>, transform_indices = @transform_3, window_bounds = array<i64: 128, 128>}, {pipeline_mode = #tpu.pipeline_mode<synchronous>, transform_indices = @transform_4, window_bounds = array<i64: 1, 128>}, {transform_indices = @transform_5, window_bounds = array<i64: 1, 16, 128>}]} {
    %c0 = arith.constant 0 : index
    %c0_0 = arith.constant 0 : index
    %c0_1 = arith.constant 0 : index
    %0 = vector.load %arg2[%c0, %c0_0, %c0_1] : memref<1x16x128xf32, #tpu.memory_space<vmem>>, vector<1x16x128xf32>
    %1 = vector.shape_cast %0 : vector<1x16x128xf32> to vector<16x128xf32>
    %2 = arith.truncf %1 : vector<16x128xf32> to vector<16x128xbf16>
    %c0_2 = arith.constant 0 : index
    %c0_3 = arith.constant 0 : index
    %3 = vector.load %arg3[%c0_2, %c0_3] : memref<128x384xbf16, #tpu.memory_space<vmem>>, vector<128x384xbf16>
    %cst = arith.constant dense<0.000000e+00> : vector<16x384xf32>
    %4 = tpu.matmul %2, %3, %cst {dimension_numbers = #tpu.dot_dimension_numbers<[1], [0], [0], [1], [0, 0, 1, 1], [], []>} : vector<16x128xbf16>, vector<128x384xbf16>, vector<16x384xf32> -> vector<16x384xf32>
    %c0_4 = arith.constant 0 : index
    %c0_5 = arith.constant 0 : index
    %5 = vector.load %arg4[%c0_4, %c0_5] : memref<1x384xf32, #tpu.memory_space<vmem>>, vector<1x384xf32>
    %6 = vector.broadcast %5 : vector<1x384xf32> to vector<16x384xf32>
    %7 = arith.addf %4, %6 : vector<16x384xf32>
    %8 = vector.extract_strided_slice %7 {offsets = [0, 0], sizes = [16, 128], strides = [1, 1]} : vector<16x384xf32> to vector<16x128xf32>
    %cst_6 = arith.constant 0.0883883461 : f32
    %9 = vector.broadcast %cst_6 : f32 to vector<16x128xf32>
    %10 = arith.mulf %8, %9 : vector<16x128xf32>
    %11 = arith.truncf %10 : vector<16x128xf32> to vector<16x128xbf16>
    %12 = vector.extract_strided_slice %7 {offsets = [0, 128], sizes = [16, 128], strides = [1, 1]} : vector<16x384xf32> to vector<16x128xf32>
    %13 = arith.truncf %12 : vector<16x128xf32> to vector<16x128xbf16>
    %14 = vector.extract_strided_slice %7 {offsets = [0, 256], sizes = [16, 128], strides = [1, 1]} : vector<16x384xf32> to vector<16x128xf32>
    %15 = arith.truncf %14 : vector<16x128xf32> to vector<16x128xbf16>
    %cst_7 = arith.constant dense<0.000000e+00> : vector<16x16xf32>
    %16 = tpu.matmul %11, %13, %cst_7 {dimension_numbers = #tpu.dot_dimension_numbers<[1], [1], [0], [0], [0, 0, 1, 0], [], []>} : vector<16x128xbf16>, vector<16x128xbf16>, vector<16x16xf32> -> vector<16x16xf32>
    %17 = tpu.iota {dimensions = array<i32: 1>} : vector<16x16xi32>
    %18 = arith.index_cast %arg0 : i32 to index
    %19 = memref.load %arg1[%18] : memref<2xi32, #tpu.memory_space<smem>>
    %20 = vector.broadcast %19 : i32 to vector<16x16xi32>
    %21 = arith.cmpi sge, %17, %20 : vector<16x16xi32>
    %cst_8 = arith.constant -1.000000e+09 : f32
    %22 = vector.broadcast %cst_8 : f32 to vector<16x16xf32>
    %23 = arith.select %21, %22, %16 : vector<16x16xi1>, vector<16x16xf32>
    %cst_9 = arith.constant dense<0xFF800000> : vector<16xf32>
    %24 = vector.multi_reduction <maximumf>, %23, %cst_9 [1] : vector<16x16xf32> to vector<16xf32>
    %25 = vector.shape_cast %24 : vector<16xf32> to vector<16x1xf32>
    %26 = vector.broadcast %25 : vector<16x1xf32> to vector<16x16xf32>
    %27 = arith.subf %23, %26 : vector<16x16xf32>
    %28 = math.exp %27 : vector<16x16xf32>
    %cst_10 = arith.constant dense<0.000000e+00> : vector<16xf32>
    %29 = vector.multi_reduction <add>, %28, %cst_10 [1] : vector<16x16xf32> to vector<16xf32>
    %30 = vector.shape_cast %29 : vector<16xf32> to vector<16x1xf32>
    %31 = arith.truncf %28 : vector<16x16xf32> to vector<16x16xbf16>
    %cst_11 = arith.constant dense<0.000000e+00> : vector<16x128xf32>
    %32 = tpu.matmul %31, %15, %cst_11 {dimension_numbers = #tpu.dot_dimension_numbers<[1], [0], [0], [1], [0, 0, 1, 1], [], []>} : vector<16x16xbf16>, vector<16x128xbf16>, vector<16x128xf32> -> vector<16x128xf32>
    %33 = tpu.reciprocal %30 {approx = true} : vector<16x1xf32> -> vector<16x1xf32>
    %34 = vector.broadcast %33 : vector<16x1xf32> to vector<16x128xf32>
    %35 = arith.mulf %32, %34 : vector<16x128xf32>
    %36 = arith.truncf %35 : vector<16x128xf32> to vector<16x128xbf16>
    %c0_12 = arith.constant 0 : index
    %c0_13 = arith.constant 0 : index
    %37 = vector.load %arg5[%c0_12, %c0_13] : memref<128x128xbf16, #tpu.memory_space<vmem>>, vector<128x128xbf16>
    %cst_14 = arith.constant dense<0.000000e+00> : vector<16x128xf32>
    %38 = tpu.matmul %36, %37, %cst_14 {dimension_numbers = #tpu.dot_dimension_numbers<[1], [0], [0], [1], [0, 0, 1, 1], [], []>} : vector<16x128xbf16>, vector<128x128xbf16>, vector<16x128xf32> -> vector<16x128xf32>
    %c0_15 = arith.constant 0 : index
    %c0_16 = arith.constant 0 : index
    %39 = vector.load %arg6[%c0_15, %c0_16] : memref<1x128xf32, #tpu.memory_space<vmem>>, vector<1x128xf32>
    %40 = vector.broadcast %39 : vector<1x128xf32> to vector<16x128xf32>
    %41 = arith.addf %38, %40 : vector<16x128xf32>
    %42 = arith.addf %41, %1 : vector<16x128xf32>
    %c0_17 = arith.constant 0 : index
    %c0_18 = arith.constant 0 : index
    %c0_19 = arith.constant 0 : index
    %43 = vector.load %arg7[%c0_17, %c0_18, %c0_19] : memref<1x16x128xf32, #tpu.memory_space<vmem>>, vector<1x16x128xf32>
    %44 = vector.shape_cast %43 : vector<1x16x128xf32> to vector<16x128xf32>
    %45 = vector.shape_cast %42 : vector<16x128xf32> to vector<1x16x128xf32>
    tpu.vector_store %arg7[%c0_17, %c0_18, %c0_19], %45 {strides = array<i32>} : memref<1x16x128xf32, #tpu.memory_space<vmem>>, vector<1x16x128xf32>,
    return
  }
  func.func @transform_0(%arg0: i32, %arg1: memref<2xi32, #tpu.memory_space<smem>>) -> (i32, i32, i32) {
    %c0_i32 = arith.constant 0 : i32
    %c0_i32_0 = arith.constant 0 : i32
    %c0_i32_1 = arith.constant 0 : i32
    return %arg0, %c0_i32, %c0_i32_0 : i32, i32, i32
  }
  func.func @transform_1(%arg0: i32, %arg1: memref<2xi32, #tpu.memory_space<smem>>) -> (i32, i32) {
    %c0_i32 = arith.constant 0 : i32
    %c0_i32_0 = arith.constant 0 : i32
    %c0_i32_1 = arith.constant 0 : i32
    return %c0_i32, %c0_i32_0 : i32, i32
  }
  func.func @transform_2(%arg0: i32, %arg1: memref<2xi32, #tpu.memory_space<smem>>) -> (i32, i32) {
    %c0_i32 = arith.constant 0 : i32
    %c0_i32_0 = arith.constant 0 : i32
    %c0_i32_1 = arith.constant 0 : i32
    return %c0_i32, %c0_i32_0 : i32, i32
  }
  func.func @transform_3(%arg0: i32, %arg1: memref<2xi32, #tpu.memory_space<smem>>) -> (i32, i32) {
    %c0_i32 = arith.constant 0 : i32
    %c0_i32_0 = arith.constant 0 : i32
    %c0_i32_1 = arith.constant 0 : i32
    return %c0_i32, %c0_i32_0 : i32, i32
  }
  func.func @transform_4(%arg0: i32, %arg1: memref<2xi32, #tpu.memory_space<smem>>) -> (i32, i32) {
    %c0_i32 = arith.constant 0 : i32
    %c0_i32_0 = arith.constant 0 : i32
    %c0_i32_1 = arith.constant 0 : i32
    return %c0_i32, %c0_i32_0 : i32, i32
  }
  func.func @transform_5(%arg0: i32, %arg1: memref<2xi32, #tpu.memory_space<smem>>) -> (i32, i32, i32) {
    %c0_i32 = arith.constant 0 : i32
    %c0_i32_0 = arith.constant 0 : i32
    %c0_i32_1 = arith.constant 0 : i32
    return %arg0, %c0_i32, %c0_i32_0 : i32, i32, i32
  }
}

module attributes {stable_mosaic.version = 11 : i64} {
  func.func @_linear_kernel(%arg0: i32, %arg1: i32, %arg2: i32, %arg3: memref<32x128xf32, #tpu.memory_space<vmem>>, %arg4: memref<128x128xbf16, #tpu.memory_space<vmem>>, %arg5: memref<1x128xf32, #tpu.memory_space<vmem>>, %arg6: memref<32x128xf32, #tpu.memory_space<vmem>>, %arg7: memref<32x128xf32, #tpu.memory_space<vmem>>) attributes {dimension_semantics = [#tpu.dimension_semantics<parallel>, #tpu.dimension_semantics<parallel>, #tpu.dimension_semantics<arbitrary>], iteration_bounds = array<i64: 1, 1, 1>, scalar_prefetch = 0 : i64, scratch_operands = 1 : i64, tpu.core_type = #tpu.core_type<tc>, window_params = [{transform_indices = @transform_0, window_bounds = array<i64: 32, 128>}, {transform_indices = @transform_1, window_bounds = array<i64: 128, 128>}, {transform_indices = @transform_2, window_bounds = array<i64: 1, 128>}, {transform_indices = @transform_3, window_bounds = array<i64: 32, 128>}]} {
    %c0_i32 = arith.constant 0 : i32
    %0 = arith.cmpi eq, %arg2, %c0_i32 : i32
    %1 = arith.extui %0 : i1 to i32
    %c0_i32_0 = arith.constant 0 : i32
    %2 = arith.cmpi ne, %1, %c0_i32_0 : i32
    scf.if %2 {
      %cst_10 = arith.constant 0.000000e+00 : f32
      %13 = vector.broadcast %cst_10 : f32 to vector<32x128xf32>
      %c0_11 = arith.constant 0 : index
      %c0_12 = arith.constant 0 : index
      %14 = vector.load %arg7[%c0_11, %c0_12] : memref<32x128xf32, #tpu.memory_space<vmem>>, vector<32x128xf32>
      tpu.vector_store %arg7[%c0_11, %c0_12], %13 {strides = array<i32>} : memref<32x128xf32, #tpu.memory_space<vmem>>, vector<32x128xf32>,
    } else {
    }
    %c0 = arith.constant 0 : index
    %c0_1 = arith.constant 0 : index
    %3 = vector.load %arg7[%c0, %c0_1] : memref<32x128xf32, #tpu.memory_space<vmem>>, vector<32x128xf32>
    %c0_2 = arith.constant 0 : index
    %c0_3 = arith.constant 0 : index
    %4 = vector.load %arg3[%c0_2, %c0_3] : memref<32x128xf32, #tpu.memory_space<vmem>>, vector<32x128xf32>
    %5 = arith.truncf %4 : vector<32x128xf32> to vector<32x128xbf16>
    %c0_4 = arith.constant 0 : index
    %c0_5 = arith.constant 0 : index
    %6 = vector.load %arg4[%c0_4, %c0_5] : memref<128x128xbf16, #tpu.memory_space<vmem>>, vector<128x128xbf16>
    %cst = arith.constant dense<0.000000e+00> : vector<32x128xf32>
    %7 = tpu.matmul %5, %6, %cst {dimension_numbers = #tpu.dot_dimension_numbers<[1], [0], [0], [1], [0, 0, 1, 1], [], []>} : vector<32x128xbf16>, vector<128x128xbf16>, vector<32x128xf32> -> vector<32x128xf32>
    %8 = arith.addf %3, %7 : vector<32x128xf32>
    %c0_6 = arith.constant 0 : index
    %c0_7 = arith.constant 0 : index
    %9 = vector.load %arg7[%c0_6, %c0_7] : memref<32x128xf32, #tpu.memory_space<vmem>>, vector<32x128xf32>
    tpu.vector_store %arg7[%c0_6, %c0_7], %8 {strides = array<i32>} : memref<32x128xf32, #tpu.memory_space<vmem>>, vector<32x128xf32>,
    %c0_i32_8 = arith.constant 0 : i32
    %10 = arith.cmpi eq, %arg2, %c0_i32_8 : i32
    %11 = arith.extui %10 : i1 to i32
    %c0_i32_9 = arith.constant 0 : i32
    %12 = arith.cmpi ne, %11, %c0_i32_9 : i32
    scf.if %12 {
      %c0_10 = arith.constant 0 : index
      %c0_11 = arith.constant 0 : index
      %13 = vector.load %arg7[%c0_10, %c0_11] : memref<32x128xf32, #tpu.memory_space<vmem>>, vector<32x128xf32>
      %c0_12 = arith.constant 0 : index
      %c0_13 = arith.constant 0 : index
      %14 = vector.load %arg5[%c0_12, %c0_13] : memref<1x128xf32, #tpu.memory_space<vmem>>, vector<1x128xf32>
      %15 = vector.broadcast %14 : vector<1x128xf32> to vector<32x128xf32>
      %16 = arith.addf %13, %15 : vector<32x128xf32>
      %c0_14 = arith.constant 0 : index
      %c0_15 = arith.constant 0 : index
      %17 = vector.load %arg6[%c0_14, %c0_15] : memref<32x128xf32, #tpu.memory_space<vmem>>, vector<32x128xf32>
      tpu.vector_store %arg6[%c0_14, %c0_15], %16 {strides = array<i32>} : memref<32x128xf32, #tpu.memory_space<vmem>>, vector<32x128xf32>,
    } else {
    }
    return
  }
  func.func @transform_0(%arg0: i32, %arg1: i32, %arg2: i32) -> (i32, i32) {
    %c0_i32 = arith.constant 0 : i32
    return %arg0, %arg2 : i32, i32
  }
  func.func @transform_1(%arg0: i32, %arg1: i32, %arg2: i32) -> (i32, i32) {
    %c0_i32 = arith.constant 0 : i32
    return %arg2, %arg1 : i32, i32
  }
  func.func @transform_2(%arg0: i32, %arg1: i32, %arg2: i32) -> (i32, i32) {
    %c0_i32 = arith.constant 0 : i32
    %c0_i32_0 = arith.constant 0 : i32
    return %c0_i32, %arg1 : i32, i32
  }
  func.func @transform_3(%arg0: i32, %arg1: i32, %arg2: i32) -> (i32, i32) {
    %c0_i32 = arith.constant 0 : i32
    return %arg0, %arg1 : i32, i32
  }
}

module attributes {stable_mosaic.version = 11 : i64} {
  func.func @_self_attn_kernel(%arg0: i32, %arg1: memref<2xi32, #tpu.memory_space<smem>>, %arg2: memref<1x8x128xf32, #tpu.memory_space<vmem>>, %arg3: memref<128x384xbf16, #tpu.memory_space<vmem>>, %arg4: memref<1x384xf32, #tpu.memory_space<vmem>>, %arg5: memref<128x128xbf16, #tpu.memory_space<vmem>>, %arg6: memref<1x128xf32, #tpu.memory_space<vmem>>, %arg7: memref<1x8x128xf32, #tpu.memory_space<vmem>>) attributes {dimension_semantics = [#tpu.dimension_semantics<parallel>], iteration_bounds = array<i64: 2>, scalar_prefetch = 1 : i64, scratch_operands = 0 : i64, tpu.core_type = #tpu.core_type<tc>, window_params = [{transform_indices = @transform_0, window_bounds = array<i64: 1, 8, 128>}, {pipeline_mode = #tpu.pipeline_mode<synchronous>, transform_indices = @transform_1, window_bounds = array<i64: 128, 384>}, {pipeline_mode = #tpu.pipeline_mode<synchronous>, transform_indices = @transform_2, window_bounds = array<i64: 1, 384>}, {pipeline_mode = #tpu.pipeline_mode<synchronous>, transform_indices = @transform_3, window_bounds = array<i64: 128, 128>}, {pipeline_mode = #tpu.pipeline_mode<synchronous>, transform_indices = @transform_4, window_bounds = array<i64: 1, 128>}, {transform_indices = @transform_5, window_bounds = array<i64: 1, 8, 128>}]} {
    %c0 = arith.constant 0 : index
    %c0_0 = arith.constant 0 : index
    %c0_1 = arith.constant 0 : index
    %0 = vector.load %arg2[%c0, %c0_0, %c0_1] : memref<1x8x128xf32, #tpu.memory_space<vmem>>, vector<1x8x128xf32>
    %1 = vector.shape_cast %0 : vector<1x8x128xf32> to vector<8x128xf32>
    %2 = arith.truncf %1 : vector<8x128xf32> to vector<8x128xbf16>
    %c0_2 = arith.constant 0 : index
    %c0_3 = arith.constant 0 : index
    %3 = vector.load %arg3[%c0_2, %c0_3] : memref<128x384xbf16, #tpu.memory_space<vmem>>, vector<128x384xbf16>
    %cst = arith.constant dense<0.000000e+00> : vector<8x384xf32>
    %4 = tpu.matmul %2, %3, %cst {dimension_numbers = #tpu.dot_dimension_numbers<[1], [0], [0], [1], [0, 0, 1, 1], [], []>} : vector<8x128xbf16>, vector<128x384xbf16>, vector<8x384xf32> -> vector<8x384xf32>
    %c0_4 = arith.constant 0 : index
    %c0_5 = arith.constant 0 : index
    %5 = vector.load %arg4[%c0_4, %c0_5] : memref<1x384xf32, #tpu.memory_space<vmem>>, vector<1x384xf32>
    %6 = vector.broadcast %5 : vector<1x384xf32> to vector<8x384xf32>
    %7 = arith.addf %4, %6 : vector<8x384xf32>
    %8 = vector.extract_strided_slice %7 {offsets = [0, 0], sizes = [8, 128], strides = [1, 1]} : vector<8x384xf32> to vector<8x128xf32>
    %cst_6 = arith.constant 0.0883883461 : f32
    %9 = vector.broadcast %cst_6 : f32 to vector<8x128xf32>
    %10 = arith.mulf %8, %9 : vector<8x128xf32>
    %11 = arith.truncf %10 : vector<8x128xf32> to vector<8x128xbf16>
    %12 = vector.extract_strided_slice %7 {offsets = [0, 128], sizes = [8, 128], strides = [1, 1]} : vector<8x384xf32> to vector<8x128xf32>
    %13 = arith.truncf %12 : vector<8x128xf32> to vector<8x128xbf16>
    %14 = vector.extract_strided_slice %7 {offsets = [0, 256], sizes = [8, 128], strides = [1, 1]} : vector<8x384xf32> to vector<8x128xf32>
    %15 = arith.truncf %14 : vector<8x128xf32> to vector<8x128xbf16>
    %cst_7 = arith.constant dense<0.000000e+00> : vector<8x8xf32>
    %16 = tpu.matmul %11, %13, %cst_7 {dimension_numbers = #tpu.dot_dimension_numbers<[1], [1], [0], [0], [0, 0, 1, 0], [], []>} : vector<8x128xbf16>, vector<8x128xbf16>, vector<8x8xf32> -> vector<8x8xf32>
    %17 = tpu.iota {dimensions = array<i32: 1>} : vector<8x8xi32>
    %18 = tpu.iota {dimensions = array<i32: 0>} : vector<8x8xi32>
    %19 = arith.cmpi sgt, %17, %18 : vector<8x8xi32>
    %cst_8 = arith.constant -1.000000e+09 : f32
    %20 = vector.broadcast %cst_8 : f32 to vector<8x8xf32>
    %21 = arith.select %19, %20, %16 : vector<8x8xi1>, vector<8x8xf32>
    %cst_9 = arith.constant dense<0xFF800000> : vector<8xf32>
    %22 = vector.multi_reduction <maximumf>, %21, %cst_9 [1] : vector<8x8xf32> to vector<8xf32>
    %23 = vector.shape_cast %22 : vector<8xf32> to vector<8x1xf32>
    %24 = vector.broadcast %23 : vector<8x1xf32> to vector<8x8xf32>
    %25 = arith.subf %21, %24 : vector<8x8xf32>
    %26 = math.exp %25 : vector<8x8xf32>
    %cst_10 = arith.constant dense<0.000000e+00> : vector<8xf32>
    %27 = vector.multi_reduction <add>, %26, %cst_10 [1] : vector<8x8xf32> to vector<8xf32>
    %28 = vector.shape_cast %27 : vector<8xf32> to vector<8x1xf32>
    %29 = arith.truncf %26 : vector<8x8xf32> to vector<8x8xbf16>
    %cst_11 = arith.constant dense<0.000000e+00> : vector<8x128xf32>
    %30 = tpu.matmul %29, %15, %cst_11 {dimension_numbers = #tpu.dot_dimension_numbers<[1], [0], [0], [1], [0, 0, 1, 1], [], []>} : vector<8x8xbf16>, vector<8x128xbf16>, vector<8x128xf32> -> vector<8x128xf32>
    %31 = tpu.reciprocal %28 {approx = true} : vector<8x1xf32> -> vector<8x1xf32>
    %32 = vector.broadcast %31 : vector<8x1xf32> to vector<8x128xf32>
    %33 = arith.mulf %30, %32 : vector<8x128xf32>
    %34 = arith.truncf %33 : vector<8x128xf32> to vector<8x128xbf16>
    %c0_12 = arith.constant 0 : index
    %c0_13 = arith.constant 0 : index
    %35 = vector.load %arg5[%c0_12, %c0_13] : memref<128x128xbf16, #tpu.memory_space<vmem>>, vector<128x128xbf16>
    %cst_14 = arith.constant dense<0.000000e+00> : vector<8x128xf32>
    %36 = tpu.matmul %34, %35, %cst_14 {dimension_numbers = #tpu.dot_dimension_numbers<[1], [0], [0], [1], [0, 0, 1, 1], [], []>} : vector<8x128xbf16>, vector<128x128xbf16>, vector<8x128xf32> -> vector<8x128xf32>
    %c0_15 = arith.constant 0 : index
    %c0_16 = arith.constant 0 : index
    %37 = vector.load %arg6[%c0_15, %c0_16] : memref<1x128xf32, #tpu.memory_space<vmem>>, vector<1x128xf32>
    %38 = vector.broadcast %37 : vector<1x128xf32> to vector<8x128xf32>
    %39 = arith.addf %36, %38 : vector<8x128xf32>
    %40 = arith.addf %39, %1 : vector<8x128xf32>
    %c0_17 = arith.constant 0 : index
    %c0_18 = arith.constant 0 : index
    %c0_19 = arith.constant 0 : index
    %41 = vector.load %arg7[%c0_17, %c0_18, %c0_19] : memref<1x8x128xf32, #tpu.memory_space<vmem>>, vector<1x8x128xf32>
    %42 = vector.shape_cast %41 : vector<1x8x128xf32> to vector<8x128xf32>
    %43 = vector.shape_cast %40 : vector<8x128xf32> to vector<1x8x128xf32>
    tpu.vector_store %arg7[%c0_17, %c0_18, %c0_19], %43 {strides = array<i32>} : memref<1x8x128xf32, #tpu.memory_space<vmem>>, vector<1x8x128xf32>,
    return
  }
  func.func @transform_0(%arg0: i32, %arg1: memref<2xi32, #tpu.memory_space<smem>>) -> (i32, i32, i32) {
    %c0_i32 = arith.constant 0 : i32
    %c0_i32_0 = arith.constant 0 : i32
    %c0_i32_1 = arith.constant 0 : i32
    return %arg0, %c0_i32, %c0_i32_0 : i32, i32, i32
  }
  func.func @transform_1(%arg0: i32, %arg1: memref<2xi32, #tpu.memory_space<smem>>) -> (i32, i32) {
    %c0_i32 = arith.constant 0 : i32
    %c0_i32_0 = arith.constant 0 : i32
    %c0_i32_1 = arith.constant 0 : i32
    return %c0_i32, %c0_i32_0 : i32, i32
  }
  func.func @transform_2(%arg0: i32, %arg1: memref<2xi32, #tpu.memory_space<smem>>) -> (i32, i32) {
    %c0_i32 = arith.constant 0 : i32
    %c0_i32_0 = arith.constant 0 : i32
    %c0_i32_1 = arith.constant 0 : i32
    return %c0_i32, %c0_i32_0 : i32, i32
  }
  func.func @transform_3(%arg0: i32, %arg1: memref<2xi32, #tpu.memory_space<smem>>) -> (i32, i32) {
    %c0_i32 = arith.constant 0 : i32
    %c0_i32_0 = arith.constant 0 : i32
    %c0_i32_1 = arith.constant 0 : i32
    return %c0_i32, %c0_i32_0 : i32, i32
  }
  func.func @transform_4(%arg0: i32, %arg1: memref<2xi32, #tpu.memory_space<smem>>) -> (i32, i32) {
    %c0_i32 = arith.constant 0 : i32
    %c0_i32_0 = arith.constant 0 : i32
    %c0_i32_1 = arith.constant 0 : i32
    return %c0_i32, %c0_i32_0 : i32, i32
  }
  func.func @transform_5(%arg0: i32, %arg1: memref<2xi32, #tpu.memory_space<smem>>) -> (i32, i32, i32) {
    %c0_i32 = arith.constant 0 : i32
    %c0_i32_0 = arith.constant 0 : i32
    %c0_i32_1 = arith.constant 0 : i32
    return %arg0, %c0_i32, %c0_i32_0 : i32, i32, i32
  }
}

module attributes {stable_mosaic.version = 11 : i64} {
  func.func @_ffn_kernel(%arg0: i32, %arg1: memref<16x128xf32, #tpu.memory_space<vmem>>, %arg2: memref<128x256xbf16, #tpu.memory_space<vmem>>, %arg3: memref<1x256xf32, #tpu.memory_space<vmem>>, %arg4: memref<256x128xbf16, #tpu.memory_space<vmem>>, %arg5: memref<1x128xf32, #tpu.memory_space<vmem>>, %arg6: memref<16x128xf32, #tpu.memory_space<vmem>>) attributes {dimension_semantics = [#tpu.dimension_semantics<parallel>], iteration_bounds = array<i64: 1>, scalar_prefetch = 0 : i64, scratch_operands = 0 : i64, tpu.core_type = #tpu.core_type<tc>, window_params = [{transform_indices = @transform_0, window_bounds = array<i64: 16, 128>}, {pipeline_mode = #tpu.pipeline_mode<synchronous>, transform_indices = @transform_1, window_bounds = array<i64: 128, 256>}, {pipeline_mode = #tpu.pipeline_mode<synchronous>, transform_indices = @transform_2, window_bounds = array<i64: 1, 256>}, {pipeline_mode = #tpu.pipeline_mode<synchronous>, transform_indices = @transform_3, window_bounds = array<i64: 256, 128>}, {pipeline_mode = #tpu.pipeline_mode<synchronous>, transform_indices = @transform_4, window_bounds = array<i64: 1, 128>}, {transform_indices = @transform_5, window_bounds = array<i64: 16, 128>}]} {
    %c0 = arith.constant 0 : index
    %c0_0 = arith.constant 0 : index
    %0 = vector.load %arg1[%c0, %c0_0] : memref<16x128xf32, #tpu.memory_space<vmem>>, vector<16x128xf32>
    %1 = arith.truncf %0 : vector<16x128xf32> to vector<16x128xbf16>
    %c0_1 = arith.constant 0 : index
    %c0_2 = arith.constant 0 : index
    %2 = vector.load %arg2[%c0_1, %c0_2] : memref<128x256xbf16, #tpu.memory_space<vmem>>, vector<128x256xbf16>
    %cst = arith.constant dense<0.000000e+00> : vector<16x256xf32>
    %3 = tpu.matmul %1, %2, %cst {dimension_numbers = #tpu.dot_dimension_numbers<[1], [0], [0], [1], [0, 0, 1, 1], [], []>} : vector<16x128xbf16>, vector<128x256xbf16>, vector<16x256xf32> -> vector<16x256xf32>
    %c0_3 = arith.constant 0 : index
    %c0_4 = arith.constant 0 : index
    %4 = vector.load %arg3[%c0_3, %c0_4] : memref<1x256xf32, #tpu.memory_space<vmem>>, vector<1x256xf32>
    %5 = vector.broadcast %4 : vector<1x256xf32> to vector<16x256xf32>
    %6 = arith.addf %3, %5 : vector<16x256xf32>
    %cst_5 = arith.constant 0.000000e+00 : f32
    %7 = vector.broadcast %cst_5 : f32 to vector<16x256xf32>
    %8 = arith.maximumf %6, %7 : vector<16x256xf32>
    %9 = arith.truncf %8 : vector<16x256xf32> to vector<16x256xbf16>
    %c0_6 = arith.constant 0 : index
    %c0_7 = arith.constant 0 : index
    %10 = vector.load %arg4[%c0_6, %c0_7] : memref<256x128xbf16, #tpu.memory_space<vmem>>, vector<256x128xbf16>
    %cst_8 = arith.constant dense<0.000000e+00> : vector<16x128xf32>
    %11 = tpu.matmul %9, %10, %cst_8 {dimension_numbers = #tpu.dot_dimension_numbers<[1], [0], [0], [1], [0, 0, 1, 1], [], []>} : vector<16x256xbf16>, vector<256x128xbf16>, vector<16x128xf32> -> vector<16x128xf32>
    %c0_9 = arith.constant 0 : index
    %c0_10 = arith.constant 0 : index
    %12 = vector.load %arg5[%c0_9, %c0_10] : memref<1x128xf32, #tpu.memory_space<vmem>>, vector<1x128xf32>
    %13 = vector.broadcast %12 : vector<1x128xf32> to vector<16x128xf32>
    %14 = arith.addf %11, %13 : vector<16x128xf32>
    %15 = arith.addf %14, %0 : vector<16x128xf32>
    %c0_11 = arith.constant 0 : index
    %c0_12 = arith.constant 0 : index
    %16 = vector.load %arg6[%c0_11, %c0_12] : memref<16x128xf32, #tpu.memory_space<vmem>>, vector<16x128xf32>
    tpu.vector_store %arg6[%c0_11, %c0_12], %15 {strides = array<i32>} : memref<16x128xf32, #tpu.memory_space<vmem>>, vector<16x128xf32>,
    return
  }
  func.func @transform_0(%arg0: i32) -> (i32, i32) {
    %c0_i32 = arith.constant 0 : i32
    %c0_i32_0 = arith.constant 0 : i32
    return %arg0, %c0_i32 : i32, i32
  }
  func.func @transform_1(%arg0: i32) -> (i32, i32) {
    %c0_i32 = arith.constant 0 : i32
    %c0_i32_0 = arith.constant 0 : i32
    %c0_i32_1 = arith.constant 0 : i32
    return %c0_i32, %c0_i32_0 : i32, i32
  }
  func.func @transform_2(%arg0: i32) -> (i32, i32) {
    %c0_i32 = arith.constant 0 : i32
    %c0_i32_0 = arith.constant 0 : i32
    %c0_i32_1 = arith.constant 0 : i32
    return %c0_i32, %c0_i32_0 : i32, i32
  }
  func.func @transform_3(%arg0: i32) -> (i32, i32) {
    %c0_i32 = arith.constant 0 : i32
    %c0_i32_0 = arith.constant 0 : i32
    %c0_i32_1 = arith.constant 0 : i32
    return %c0_i32, %c0_i32_0 : i32, i32
  }
  func.func @transform_4(%arg0: i32) -> (i32, i32) {
    %c0_i32 = arith.constant 0 : i32
    %c0_i32_0 = arith.constant 0 : i32
    %c0_i32_1 = arith.constant 0 : i32
    return %c0_i32, %c0_i32_0 : i32, i32
  }
  func.func @transform_5(%arg0: i32) -> (i32, i32) {
    %c0_i32 = arith.constant 0 : i32
    %c0_i32_0 = arith.constant 0 : i32
    return %arg0, %c0_i32 : i32, i32
  }
}

module attributes {stable_mosaic.version = 11 : i64} {
  func.func @_linear_kernel(%arg0: i32, %arg1: i32, %arg2: i32, %arg3: memref<16x128xf32, #tpu.memory_space<vmem>>, %arg4: memref<128x256xbf16, #tpu.memory_space<vmem>>, %arg5: memref<1x256xf32, #tpu.memory_space<vmem>>, %arg6: memref<16x256xf32, #tpu.memory_space<vmem>>, %arg7: memref<16x256xf32, #tpu.memory_space<vmem>>) attributes {dimension_semantics = [#tpu.dimension_semantics<parallel>, #tpu.dimension_semantics<parallel>, #tpu.dimension_semantics<arbitrary>], iteration_bounds = array<i64: 1, 1, 1>, scalar_prefetch = 0 : i64, scratch_operands = 1 : i64, tpu.core_type = #tpu.core_type<tc>, window_params = [{transform_indices = @transform_0, window_bounds = array<i64: 16, 128>}, {transform_indices = @transform_1, window_bounds = array<i64: 128, 256>}, {transform_indices = @transform_2, window_bounds = array<i64: 1, 256>}, {transform_indices = @transform_3, window_bounds = array<i64: 16, 256>}]} {
    %c0_i32 = arith.constant 0 : i32
    %0 = arith.cmpi eq, %arg2, %c0_i32 : i32
    %1 = arith.extui %0 : i1 to i32
    %c0_i32_0 = arith.constant 0 : i32
    %2 = arith.cmpi ne, %1, %c0_i32_0 : i32
    scf.if %2 {
      %cst_10 = arith.constant 0.000000e+00 : f32
      %13 = vector.broadcast %cst_10 : f32 to vector<16x256xf32>
      %c0_11 = arith.constant 0 : index
      %c0_12 = arith.constant 0 : index
      %14 = vector.load %arg7[%c0_11, %c0_12] : memref<16x256xf32, #tpu.memory_space<vmem>>, vector<16x256xf32>
      tpu.vector_store %arg7[%c0_11, %c0_12], %13 {strides = array<i32>} : memref<16x256xf32, #tpu.memory_space<vmem>>, vector<16x256xf32>,
    } else {
    }
    %c0 = arith.constant 0 : index
    %c0_1 = arith.constant 0 : index
    %3 = vector.load %arg7[%c0, %c0_1] : memref<16x256xf32, #tpu.memory_space<vmem>>, vector<16x256xf32>
    %c0_2 = arith.constant 0 : index
    %c0_3 = arith.constant 0 : index
    %4 = vector.load %arg3[%c0_2, %c0_3] : memref<16x128xf32, #tpu.memory_space<vmem>>, vector<16x128xf32>
    %5 = arith.truncf %4 : vector<16x128xf32> to vector<16x128xbf16>
    %c0_4 = arith.constant 0 : index
    %c0_5 = arith.constant 0 : index
    %6 = vector.load %arg4[%c0_4, %c0_5] : memref<128x256xbf16, #tpu.memory_space<vmem>>, vector<128x256xbf16>
    %cst = arith.constant dense<0.000000e+00> : vector<16x256xf32>
    %7 = tpu.matmul %5, %6, %cst {dimension_numbers = #tpu.dot_dimension_numbers<[1], [0], [0], [1], [0, 0, 1, 1], [], []>} : vector<16x128xbf16>, vector<128x256xbf16>, vector<16x256xf32> -> vector<16x256xf32>
    %8 = arith.addf %3, %7 : vector<16x256xf32>
    %c0_6 = arith.constant 0 : index
    %c0_7 = arith.constant 0 : index
    %9 = vector.load %arg7[%c0_6, %c0_7] : memref<16x256xf32, #tpu.memory_space<vmem>>, vector<16x256xf32>
    tpu.vector_store %arg7[%c0_6, %c0_7], %8 {strides = array<i32>} : memref<16x256xf32, #tpu.memory_space<vmem>>, vector<16x256xf32>,
    %c0_i32_8 = arith.constant 0 : i32
    %10 = arith.cmpi eq, %arg2, %c0_i32_8 : i32
    %11 = arith.extui %10 : i1 to i32
    %c0_i32_9 = arith.constant 0 : i32
    %12 = arith.cmpi ne, %11, %c0_i32_9 : i32
    scf.if %12 {
      %c0_10 = arith.constant 0 : index
      %c0_11 = arith.constant 0 : index
      %13 = vector.load %arg7[%c0_10, %c0_11] : memref<16x256xf32, #tpu.memory_space<vmem>>, vector<16x256xf32>
      %c0_12 = arith.constant 0 : index
      %c0_13 = arith.constant 0 : index
      %14 = vector.load %arg5[%c0_12, %c0_13] : memref<1x256xf32, #tpu.memory_space<vmem>>, vector<1x256xf32>
      %15 = vector.broadcast %14 : vector<1x256xf32> to vector<16x256xf32>
      %16 = arith.addf %13, %15 : vector<16x256xf32>
      %c0_14 = arith.constant 0 : index
      %c0_15 = arith.constant 0 : index
      %17 = vector.load %arg6[%c0_14, %c0_15] : memref<16x256xf32, #tpu.memory_space<vmem>>, vector<16x256xf32>
      tpu.vector_store %arg6[%c0_14, %c0_15], %16 {strides = array<i32>} : memref<16x256xf32, #tpu.memory_space<vmem>>, vector<16x256xf32>,
    } else {
    }
    return
  }
  func.func @transform_0(%arg0: i32, %arg1: i32, %arg2: i32) -> (i32, i32) {
    %c0_i32 = arith.constant 0 : i32
    return %arg0, %arg2 : i32, i32
  }
  func.func @transform_1(%arg0: i32, %arg1: i32, %arg2: i32) -> (i32, i32) {
    %c0_i32 = arith.constant 0 : i32
    return %arg2, %arg1 : i32, i32
  }
  func.func @transform_2(%arg0: i32, %arg1: i32, %arg2: i32) -> (i32, i32) {
    %c0_i32 = arith.constant 0 : i32
    %c0_i32_0 = arith.constant 0 : i32
    return %c0_i32, %arg1 : i32, i32
  }
  func.func @transform_3(%arg0: i32, %arg1: i32, %arg2: i32) -> (i32, i32) {
    %c0_i32 = arith.constant 0 : i32
    return %arg0, %arg1 : i32, i32
  }
}

module attributes {stable_mosaic.version = 11 : i64} {
  func.func @_cross_attn_kernel(%arg0: i32, %arg1: memref<2xi32, #tpu.memory_space<smem>>, %arg2: memref<1x8x128xf32, #tpu.memory_space<vmem>>, %arg3: memref<1x16x128xf32, #tpu.memory_space<vmem>>, %arg4: memref<128x128xbf16, #tpu.memory_space<vmem>>, %arg5: memref<1x128xf32, #tpu.memory_space<vmem>>, %arg6: memref<128x256xbf16, #tpu.memory_space<vmem>>, %arg7: memref<1x256xf32, #tpu.memory_space<vmem>>, %arg8: memref<128x128xbf16, #tpu.memory_space<vmem>>, %arg9: memref<1x128xf32, #tpu.memory_space<vmem>>, %arg10: memref<1x8x128xf32, #tpu.memory_space<vmem>>) attributes {dimension_semantics = [#tpu.dimension_semantics<parallel>], iteration_bounds = array<i64: 2>, scalar_prefetch = 1 : i64, scratch_operands = 0 : i64, tpu.core_type = #tpu.core_type<tc>, window_params = [{transform_indices = @transform_0, window_bounds = array<i64: 1, 8, 128>}, {transform_indices = @transform_1, window_bounds = array<i64: 1, 16, 128>}, {pipeline_mode = #tpu.pipeline_mode<synchronous>, transform_indices = @transform_2, window_bounds = array<i64: 128, 128>}, {pipeline_mode = #tpu.pipeline_mode<synchronous>, transform_indices = @transform_3, window_bounds = array<i64: 1, 128>}, {pipeline_mode = #tpu.pipeline_mode<synchronous>, transform_indices = @transform_4, window_bounds = array<i64: 128, 256>}, {pipeline_mode = #tpu.pipeline_mode<synchronous>, transform_indices = @transform_5, window_bounds = array<i64: 1, 256>}, {pipeline_mode = #tpu.pipeline_mode<synchronous>, transform_indices = @transform_6, window_bounds = array<i64: 128, 128>}, {pipeline_mode = #tpu.pipeline_mode<synchronous>, transform_indices = @transform_7, window_bounds = array<i64: 1, 128>}, {transform_indices = @transform_8, window_bounds = array<i64: 1, 8, 128>}]} {
    %c0 = arith.constant 0 : index
    %c0_0 = arith.constant 0 : index
    %c0_1 = arith.constant 0 : index
    %0 = vector.load %arg2[%c0, %c0_0, %c0_1] : memref<1x8x128xf32, #tpu.memory_space<vmem>>, vector<1x8x128xf32>
    %1 = vector.shape_cast %0 : vector<1x8x128xf32> to vector<8x128xf32>
    %c0_2 = arith.constant 0 : index
    %c0_3 = arith.constant 0 : index
    %c0_4 = arith.constant 0 : index
    %2 = vector.load %arg3[%c0_2, %c0_3, %c0_4] : memref<1x16x128xf32, #tpu.memory_space<vmem>>, vector<1x16x128xf32>
    %3 = vector.shape_cast %2 : vector<1x16x128xf32> to vector<16x128xf32>
    %4 = arith.truncf %1 : vector<8x128xf32> to vector<8x128xbf16>
    %c0_5 = arith.constant 0 : index
    %c0_6 = arith.constant 0 : index
    %5 = vector.load %arg4[%c0_5, %c0_6] : memref<128x128xbf16, #tpu.memory_space<vmem>>, vector<128x128xbf16>
    %cst = arith.constant dense<0.000000e+00> : vector<8x128xf32>
    %6 = tpu.matmul %4, %5, %cst {dimension_numbers = #tpu.dot_dimension_numbers<[1], [0], [0], [1], [0, 0, 1, 1], [], []>} : vector<8x128xbf16>, vector<128x128xbf16>, vector<8x128xf32> -> vector<8x128xf32>
    %c0_7 = arith.constant 0 : index
    %c0_8 = arith.constant 0 : index
    %7 = vector.load %arg5[%c0_7, %c0_8] : memref<1x128xf32, #tpu.memory_space<vmem>>, vector<1x128xf32>
    %8 = vector.broadcast %7 : vector<1x128xf32> to vector<8x128xf32>
    %9 = arith.addf %6, %8 : vector<8x128xf32>
    %10 = arith.truncf %3 : vector<16x128xf32> to vector<16x128xbf16>
    %c0_9 = arith.constant 0 : index
    %c0_10 = arith.constant 0 : index
    %11 = vector.load %arg6[%c0_9, %c0_10] : memref<128x256xbf16, #tpu.memory_space<vmem>>, vector<128x256xbf16>
    %cst_11 = arith.constant dense<0.000000e+00> : vector<16x256xf32>
    %12 = tpu.matmul %10, %11, %cst_11 {dimension_numbers = #tpu.dot_dimension_numbers<[1], [0], [0], [1], [0, 0, 1, 1], [], []>} : vector<16x128xbf16>, vector<128x256xbf16>, vector<16x256xf32> -> vector<16x256xf32>
    %c0_12 = arith.constant 0 : index
    %c0_13 = arith.constant 0 : index
    %13 = vector.load %arg7[%c0_12, %c0_13] : memref<1x256xf32, #tpu.memory_space<vmem>>, vector<1x256xf32>
    %14 = vector.broadcast %13 : vector<1x256xf32> to vector<16x256xf32>
    %15 = arith.addf %12, %14 : vector<16x256xf32>
    %cst_14 = arith.constant 0.0883883461 : f32
    %16 = vector.broadcast %cst_14 : f32 to vector<8x128xf32>
    %17 = arith.mulf %9, %16 : vector<8x128xf32>
    %18 = arith.truncf %17 : vector<8x128xf32> to vector<8x128xbf16>
    %19 = vector.extract_strided_slice %15 {offsets = [0, 0], sizes = [16, 128], strides = [1, 1]} : vector<16x256xf32> to vector<16x128xf32>
    %20 = arith.truncf %19 : vector<16x128xf32> to vector<16x128xbf16>
    %21 = vector.extract_strided_slice %15 {offsets = [0, 128], sizes = [16, 128], strides = [1, 1]} : vector<16x256xf32> to vector<16x128xf32>
    %22 = arith.truncf %21 : vector<16x128xf32> to vector<16x128xbf16>
    %cst_15 = arith.constant dense<0.000000e+00> : vector<8x16xf32>
    %23 = tpu.matmul %18, %20, %cst_15 {dimension_numbers = #tpu.dot_dimension_numbers<[1], [1], [0], [0], [0, 0, 1, 0], [], []>} : vector<8x128xbf16>, vector<16x128xbf16>, vector<8x16xf32> -> vector<8x16xf32>
    %24 = tpu.iota {dimensions = array<i32: 1>} : vector<8x16xi32>
    %25 = arith.index_cast %arg0 : i32 to index
    %26 = memref.load %arg1[%25] : memref<2xi32, #tpu.memory_space<smem>>
    %27 = vector.broadcast %26 : i32 to vector<8x16xi32>
    %28 = arith.cmpi sge, %24, %27 : vector<8x16xi32>
    %cst_16 = arith.constant -1.000000e+09 : f32
    %29 = vector.broadcast %cst_16 : f32 to vector<8x16xf32>
    %30 = arith.select %28, %29, %23 : vector<8x16xi1>, vector<8x16xf32>
    %cst_17 = arith.constant dense<0xFF800000> : vector<8xf32>
    %31 = vector.multi_reduction <maximumf>, %30, %cst_17 [1] : vector<8x16xf32> to vector<8xf32>
    %32 = vector.shape_cast %31 : vector<8xf32> to vector<8x1xf32>
    %33 = vector.broadcast %32 : vector<8x1xf32> to vector<8x16xf32>
    %34 = arith.subf %30, %33 : vector<8x16xf32>
    %35 = math.exp %34 : vector<8x16xf32>
    %cst_18 = arith.constant dense<0.000000e+00> : vector<8xf32>
    %36 = vector.multi_reduction <add>, %35, %cst_18 [1] : vector<8x16xf32> to vector<8xf32>
    %37 = vector.shape_cast %36 : vector<8xf32> to vector<8x1xf32>
    %38 = arith.truncf %35 : vector<8x16xf32> to vector<8x16xbf16>
    %cst_19 = arith.constant dense<0.000000e+00> : vector<8x128xf32>
    %39 = tpu.matmul %38, %22, %cst_19 {dimension_numbers = #tpu.dot_dimension_numbers<[1], [0], [0], [1], [0, 0, 1, 1], [], []>} : vector<8x16xbf16>, vector<16x128xbf16>, vector<8x128xf32> -> vector<8x128xf32>
    %40 = tpu.reciprocal %37 {approx = true} : vector<8x1xf32> -> vector<8x1xf32>
    %41 = vector.broadcast %40 : vector<8x1xf32> to vector<8x128xf32>
    %42 = arith.mulf %39, %41 : vector<8x128xf32>
    %43 = arith.truncf %42 : vector<8x128xf32> to vector<8x128xbf16>
    %c0_20 = arith.constant 0 : index
    %c0_21 = arith.constant 0 : index
    %44 = vector.load %arg8[%c0_20, %c0_21] : memref<128x128xbf16, #tpu.memory_space<vmem>>, vector<128x128xbf16>
    %cst_22 = arith.constant dense<0.000000e+00> : vector<8x128xf32>
    %45 = tpu.matmul %43, %44, %cst_22 {dimension_numbers = #tpu.dot_dimension_numbers<[1], [0], [0], [1], [0, 0, 1, 1], [], []>} : vector<8x128xbf16>, vector<128x128xbf16>, vector<8x128xf32> -> vector<8x128xf32>
    %c0_23 = arith.constant 0 : index
    %c0_24 = arith.constant 0 : index
    %46 = vector.load %arg9[%c0_23, %c0_24] : memref<1x128xf32, #tpu.memory_space<vmem>>, vector<1x128xf32>
    %47 = vector.broadcast %46 : vector<1x128xf32> to vector<8x128xf32>
    %48 = arith.addf %45, %47 : vector<8x128xf32>
    %49 = arith.addf %48, %1 : vector<8x128xf32>
    %c0_25 = arith.constant 0 : index
    %c0_26 = arith.constant 0 : index
    %c0_27 = arith.constant 0 : index
    %50 = vector.load %arg10[%c0_25, %c0_26, %c0_27] : memref<1x8x128xf32, #tpu.memory_space<vmem>>, vector<1x8x128xf32>
    %51 = vector.shape_cast %50 : vector<1x8x128xf32> to vector<8x128xf32>
    %52 = vector.shape_cast %49 : vector<8x128xf32> to vector<1x8x128xf32>
    tpu.vector_store %arg10[%c0_25, %c0_26, %c0_27], %52 {strides = array<i32>} : memref<1x8x128xf32, #tpu.memory_space<vmem>>, vector<1x8x128xf32>,
    return
  }
  func.func @transform_0(%arg0: i32, %arg1: memref<2xi32, #tpu.memory_space<smem>>) -> (i32, i32, i32) {
    %c0_i32 = arith.constant 0 : i32
    %c0_i32_0 = arith.constant 0 : i32
    %c0_i32_1 = arith.constant 0 : i32
    return %arg0, %c0_i32, %c0_i32_0 : i32, i32, i32
  }
  func.func @transform_1(%arg0: i32, %arg1: memref<2xi32, #tpu.memory_space<smem>>) -> (i32, i32, i32) {
    %c0_i32 = arith.constant 0 : i32
    %c0_i32_0 = arith.constant 0 : i32
    %c0_i32_1 = arith.constant 0 : i32
    return %arg0, %c0_i32, %c0_i32_0 : i32, i32, i32
  }
  func.func @transform_2(%arg0: i32, %arg1: memref<2xi32, #tpu.memory_space<smem>>) -> (i32, i32) {
    %c0_i32 = arith.constant 0 : i32
    %c0_i32_0 = arith.constant 0 : i32
    %c0_i32_1 = arith.constant 0 : i32
    return %c0_i32, %c0_i32_0 : i32, i32
  }
  func.func @transform_3(%arg0: i32, %arg1: memref<2xi32, #tpu.memory_space<smem>>) -> (i32, i32) {
    %c0_i32 = arith.constant 0 : i32
    %c0_i32_0 = arith.constant 0 : i32
    %c0_i32_1 = arith.constant 0 : i32
    return %c0_i32, %c0_i32_0 : i32, i32
  }
  func.func @transform_4(%arg0: i32, %arg1: memref<2xi32, #tpu.memory_space<smem>>) -> (i32, i32) {
    %c0_i32 = arith.constant 0 : i32
    %c0_i32_0 = arith.constant 0 : i32
    %c0_i32_1 = arith.constant 0 : i32
    return %c0_i32, %c0_i32_0 : i32, i32
  }
  func.func @transform_5(%arg0: i32, %arg1: memref<2xi32, #tpu.memory_space<smem>>) -> (i32, i32) {
    %c0_i32 = arith.constant 0 : i32
    %c0_i32_0 = arith.constant 0 : i32
    %c0_i32_1 = arith.constant 0 : i32
    return %c0_i32, %c0_i32_0 : i32, i32
  }
  func.func @transform_6(%arg0: i32, %arg1: memref<2xi32, #tpu.memory_space<smem>>) -> (i32, i32) {
    %c0_i32 = arith.constant 0 : i32
    %c0_i32_0 = arith.constant 0 : i32
    %c0_i32_1 = arith.constant 0 : i32
    return %c0_i32, %c0_i32_0 : i32, i32
  }
  func.func @transform_7(%arg0: i32, %arg1: memref<2xi32, #tpu.memory_space<smem>>) -> (i32, i32) {
    %c0_i32 = arith.constant 0 : i32
    %c0_i32_0 = arith.constant 0 : i32
    %c0_i32_1 = arith.constant 0 : i32
    return %c0_i32, %c0_i32_0 : i32, i32
  }
  func.func @transform_8(%arg0: i32, %arg1: memref<2xi32, #tpu.memory_space<smem>>) -> (i32, i32, i32) {
    %c0_i32 = arith.constant 0 : i32
    %c0_i32_0 = arith.constant 0 : i32
    %c0_i32_1 = arith.constant 0 : i32
    return %arg0, %c0_i32, %c0_i32_0 : i32, i32, i32
  }
}

</mosaic_0001>

<bundles_post_ra>
// kernel: transformer_forward.7
= control target key start
LH: loop header
LB: loop body
LE: loop exit
PB: predicated region body
PF: predicated region fallthrough
CT: control target
= control target key end

     0   :  { %8 = vsyncpa [#allocation4], 0  ;;  %s334_s0 = inlined_call_operand.hbm [shape: f32[32,128], index: 0, kind: input, shape index: {}]   ;;  %s335_s1 = inlined_call_operand.hbm [shape: bf16[128,128], index: 1, kind: input, shape index: {}]   ;;  %s336_s2 = inlined_call_operand.vmem [shape: f32[1,128], index: 2, kind: input, shape index: {}]   ;;  %s337_s3 = inlined_call_operand.vmem [shape: f32[32,128], index: 3, kind: output, shape index: {}]  }
   0x1   :  { %s14_s14 = sshll.u32 %s334_s0, 4  ;;  %s15_s14 = int_to_ptr.hbm [resolvable:$true] %s14_s14 }
   0x2   :  { %9 = vsyncpa [#allocation6], 0  ;;  %s287_s15 = smov [#allocation3]   ;;  %s27_s19 = sshll.u32 %s335_s1, 4  ;;  %s28_s19 = int_to_ptr.hbm [resolvable:$true] %s27_s19 }
   0x3   :  { %s16_s16 = sshll.u32 %s287_s15, 4  ;;  %s288_s20 = smov 128   ;;  %s17_s16 = int_to_ptr.vmem [resolvable:$true] %s16_s16 }
   0x4   :  { %s289_s21 = smov 8   ;;  %s290_s22 = smov [#allocation5]  }
   0x5   :  { %22 = dma.hbm_to_vmem [thread:$0]  %s15_s14, 512, %s17_s16, [#allocation4], %s288_s20, %s288_s20, %s289_s21  }
   0x6   :  { %s29_s23 = sshll.u32 %s290_s22, 4  ;;  %s291_s24 = smov 64   ;;  %s30_s23 = int_to_ptr.vmem [resolvable:$true] %s29_s23 }
   0x7   :  { %s292_s25 = smov 4  }
   0x8   :  { %35 = dma.hbm_to_vmem [thread:$0]  %s28_s19, 1024, %s30_s23, [#allocation6], %s291_s24, %s291_s24, %s292_s25  }
   0x9   :  { %283 = dma.done.wait [#allocation4], 512  }
   0xa   :  { %284 = vsyncadd [#allocation4], 4294966784 }
   0xb   :  { %285 = dma.done.wait [#allocation6], 1024  }
   0xc   :  { %286 = vsyncadd [#allocation6], 4294966272  ;;  %v219_v0 = vld [vmem:[#allocation5 + $0x38] sm:$0xff]  ;;  %v218_v1 = vld [vmem:[#allocation5 + $0x30] sm:$0xff] }
   0xd   :  { %128 = vmatpush.bf16.msra.mxu0 %v219_v0  ;;  %220 = vmatpush.bf16.msra.mxu1 %v219_v0  ;;  %v217_v2 = vld [vmem:[#allocation5 + $0x28] sm:$0xff]  ;;  %v216_v3 = vld [vmem:[#allocation5 + $0x20] sm:$0xff]  ;;  %v215_v4 = vld [vmem:[#allocation5 + $0x18] sm:$0xff] }
   0xe   :  { %v214_v5 = vld [vmem:[#allocation5 + $0x10] sm:$0xff]  ;;  %v213_v6 = vld [vmem:[#allocation5 + $0x8] sm:$0xff]  ;;  %v212_v7 = vld [vmem:[#allocation5] sm:$0xff] }
   0xf   :  { %v58_v8 = vld [vmem:[#allocation3] sm:$0xff]  ;;  %v59_v9 = vld [vmem:[#allocation3 + $0x8] sm:$0xff]  ;;  %v60_v10 = vld [vmem:[#allocation3 + $0x10] sm:$0xff] }
  0x10   :  { %v61_v11 = vld [vmem:[#allocation3 + $0x18] sm:$0xff]  ;;  %v62_v12 = vpack.c.bf16 %v59_v9, %v58_v8  ;;  %v234_v14 = vld [vmem:[%s336_s2] ss:$0 sm:$0xff] }
  0x11   :  { %129 = vmatpush.bf16.msra.mxu0 %v218_v1  ;;  %221 = vmatpush.bf16.msra.mxu1 %v218_v1  ;;  %v63_v13 = vpack.c.bf16 %v61_v11, %v60_v10 }
  0x15   :  { %130 = vmatpush.bf16.msra.mxu0 %v217_v2  ;;  %222 = vmatpush.bf16.msra.mxu1 %v217_v2 }
  0x19   :  { %131 = vmatpush.bf16.msra.mxu0 %v216_v3  ;;  %223 = vmatpush.bf16.msra.mxu1 %v216_v3 }
  0x1d   :  { %132 = vmatpush.bf16.msra.mxu0 %v215_v4  ;;  %224 = vmatpush.bf16.msra.mxu1 %v215_v4 }
  0x21   :  { %133 = vmatpush.bf16.msra.mxu0 %v214_v5  ;;  %225 = vmatpush.bf16.msra.mxu1 %v214_v5 }
  0x25   :  { %134 = vmatpush.bf16.msra.mxu0 %v213_v6  ;;  %226 = vmatpush.bf16.msra.mxu1 %v213_v6 }
  0x29   :  { %135 = vmatpush.bf16.msra.mxu0 %v212_v7  ;;  %227 = vmatpush.bf16.msra.mxu1 %v212_v7 }
  0x2c   :  { %136 = vmatmul.bf16.vlgmr.msra.gmra.mxu0 %v62_v12  ;;  %141 = vmatmul.bf16.vlgmr.msra.gmra.mxu1 %v63_v13 }
  0xa9   :  { %v137_v15 = vpop.f32.mrf.mxu0  ;;  %v142_v16 = vpop.f32.mrf.mxu1 }
  0xaa   :  { %v166_v17 = vadd.f32 %v234_v14, %v137_v15  ;;  %v168_v18 = vadd.f32 %v234_v14, %v142_v16 }
  0xac   :  { %170 = vst [vmem:[%s337_s3] sm:$0xff] %v166_v17 }
  0xad   :  { %172 = vst [vmem:[%s337_s3 + $0x10] sm:$0xff] %v168_v18 }
  0xb1   :  { %v139_v19 = vpop.f32.mrf.mxu0  ;;  %v144_v20 = vpop.f32.mrf.mxu1 }
  0xb2   :  { %v167_v21 = vadd.f32 %v234_v14, %v139_v19  ;;  %v169_v22 = vadd.f32 %v234_v14, %v144_v20 }
  0xb4   :  { %171 = vst [vmem:[%s337_s3 + $0x8] sm:$0xff] %v167_v21 }
  0xb5   :  { %173 = vst [vmem:[%s337_s3 + $0x18] sm:$0xff] %v169_v22 }
  0xb6   :  { %178 = vsyncpa [#allocation4], 1 }
  0xb7   :  { %179 = vsyncpa [#allocation6], 1 }

// kernel: transformer_forward.8
= control target key start
LH: loop header
LB: loop body
LE: loop exit
PB: predicated region body
PF: predicated region fallthrough
CT: control target
= control target key end

     0   :  { %s1024_s24 = smov [#allocation3]   ;;  %s1142_s0 = inlined_call_operand.vmem [shape: s32[2], index: 0, kind: input, shape index: {}]   ;;  %s1143_s1 = inlined_call_operand.vmem [shape: f32[2,16,128], index: 1, kind: input, shape index: {}]   ;;  %s1144_s2 = inlined_call_operand.hbm [shape: bf16[128,384], index: 2, kind: input, shape index: {}]   ;;  %s1145_s3 = inlined_call_operand.vmem [shape: f32[1,384], index: 3, kind: input, shape index: {}]   ;;  %s1146_s4 = inlined_call_operand.hbm [shape: bf16[128,128], index: 4, kind: input, shape index: {}]   ;;  %s1147_s5 = inlined_call_operand.vmem [shape: f32[1,128], index: 5, kind: input, shape index: {}]   ;;  %s1148_s6 = inlined_call_operand.vmem [shape: f32[2,16,128], index: 6, kind: output, shape index: {}]  }
   0x1   :  { %s12_s23 = sshll.u32 %s1142_s0, 4  ;;  %s13_s23 = int_to_ptr.vmem [resolvable:$true] %s12_s23 }
   0x2   :  { %15 = dma.vmem_to_smem %s13_s23, 16, %s1024_s24, [#allocation2] }
   0x3   :  { %1010 = dma.done.wait [#allocation2], 16 }
   0x4   :  { %1011 = vsyncadd [#allocation2], 4294967280 }
   0x5   :  { %18 = sfence }
   0x6   :  { %19 = vsyncpa [#allocation5], 0 }
   0x7   :  { %20 = vsyncpa [#allocation7], 0  ;;  %s1069_s25 = smov 0  }
   0x8 LB: > { %s178_s0 = sshll.u32 %s1144_s2, 4  ;;  %s1078_s28 = sadd.s32 4294967295, %s1022_s25   ;;  %s1022_s25 = sphi %s1069_s25, %s26_s25   ;;  %s179_s0 = int_to_ptr.hbm [resolvable:$true] %s178_s0 }
   0x9   : > { %p715_p0 = scmp.ge.s32.totalorder %s1022_s25, 1  ;;  %p167_p1 = scmp.lt.s32.totalorder %s1022_s25, 3 }
   0xa   : > { %p906_p2 = scmp.eq.s32.totalorder %s1078_s28, 0  ;;  %s1025_s30 = smov [#allocation4]  }
   0xb   : > { %p1083_p3 = pnand %p715_p0, %p167_p1  ;;  %s180_s7 = sshll.u32 %s1025_s30, 4  ;;  %s181_s7 = int_to_ptr.vmem [resolvable:$true] %s180_s7 }
   0xc   : > { %s195_s10 = sshll.u32 %s1146_s4, 4  ;;  %s1026_s11 = smov [#allocation6]   ;;  %s196_s10 = int_to_ptr.hbm [resolvable:$true] %s195_s10 }
   0xd   : > { %p899_p4 = pneg %p1083_p3  ;;  %s197_s12 = sshll.u32 %s1026_s11, 4  ;;  %s198_s12 = int_to_ptr.vmem [resolvable:$true] %s197_s12 }
   0xe   : > { %s1027_s13 = smov 192   ;;  %s1028_s14 = smov 12  }
   0xf   : > { %p900_p5 = pnand %p906_p2, %p899_p4  ;;  %s1029_s15 = smov 64  }
  0x10   : > { %s1030_s16 = smov 4   ;;  %224 = sbr.rel (%p1083_p3) target bundleno = 757 (0x2f5), region = 40 }
  0x11   : > { %902 = dma.hbm_to_vmem [thread:$0]  (!%p900_p5), %s179_s0, 3072, %s181_s7, [#allocation5], %s1027_s13, %s1027_s13, %s1028_s14  }
  0x12   : > { %905 = dma.hbm_to_vmem [thread:$0]  (!%p900_p5), %s196_s10, 1024, %s198_s12, [#allocation7], %s1029_s15, %s1029_s15, %s1030_s16  }
  0x15   : > { %1013 = dma.done.wait (%p906_p2), [#allocation5], 3072  }
  0x16   : > { %1015 = vsyncadd (%p906_p2), [#allocation5], 4294964224 }
  0x17   : > { %1017 = dma.done.wait (%p906_p2), [#allocation7], 1024  }
  0x18   : > { %1019 = vsyncadd (%p906_p2), [#allocation7], 4294966272  ;;  %v880_v0 = vld [vmem:[#allocation4 + $0xac] sm:$0xf]  ;;  %v814_v1 = vld [vmem:[#allocation4 + $0xb4] sm:$0xf0] }
  0x19   : > { %v877_v2 = vld [vmem:[#allocation4 + $0x94] sm:$0xf]  ;;  %v817_v3 = vor.u32 %v880_v0, %v814_v1  ;;  %v802_v4 = vld [vmem:[#allocation4 + $0x9c] sm:$0xf0]  ;;  %v812_v5 = vld [vmem:[#allocation4 + $0xa8] sm:$0xf] }
  0x1a   : > { %v881_v6 = vld [vmem:[#allocation4 + $0xb0] sm:$0xf0]  ;;  %v800_v8 = vld [vmem:[#allocation4 + $0x90] sm:$0xf]  ;;  %v805_v9 = vor.u32 %v877_v2, %v802_v4  ;;  %v878_v10 = vld [vmem:[#allocation4 + $0x98] sm:$0xf0] }
  0x1b   : > { %v813_v7 = vor.u32 %v881_v6, %v812_v5  ;;  %454 = vmatpush.bf16.msra.mxu1 %v817_v3  ;;  %v874_v11 = vld [vmem:[#allocation4 + $0x7c] sm:$0xf]  ;;  %v790_v12 = vld [vmem:[#allocation4 + $0x84] sm:$0xf0]  ;;  %v801_v13 = vor.u32 %v878_v10, %v800_v8  ;;  %v788_v14 = vld [vmem:[#allocation4 + $0x78] sm:$0xf] }
  0x1c   : > { %v875_v15 = vld [vmem:[#allocation4 + $0x80] sm:$0xf0]  ;;  %v793_v16 = vor.u32 %v874_v11, %v790_v12  ;;  %v778_v18 = vld [vmem:[#allocation4 + $0x6c] sm:$0xf0]  ;;  %v776_v20 = vld [vmem:[#allocation4 + $0x60] sm:$0xf] }
  0x1d   : > { %440 = vmatpush.bf16.msra.mxu0 %v813_v7  ;;  %v871_v17 = vld [vmem:[#allocation4 + $0x64] sm:$0xf]  ;;  %v789_v19 = vor.u32 %v875_v15, %v788_v14  ;;  %v872_v21 = vld [vmem:[#allocation4 + $0x68] sm:$0xf0]  ;;  %v766_v24 = vld [vmem:[#allocation4 + $0x54] sm:$0xf0] }
  0x1e   : > { %v781_v22 = vor.u32 %v871_v17, %v778_v18  ;;  %v868_v23 = vld [vmem:[#allocation4 + $0x4c] sm:$0xf]  ;;  %v777_v25 = vor.u32 %v872_v21, %v776_v20  ;;  %v764_v26 = vld [vmem:[#allocation4 + $0x48] sm:$0xf]  ;;  %v869_v27 = vld [vmem:[#allocation4 + $0x50] sm:$0xf0] }
  0x1f   : > { %455 = vmatpush.bf16.msra.mxu1 %v805_v9  ;;  %p258_p6 = scmp.lt.s32.totalorder %s1078_s28, 1  ;;  %v769_v28 = vor.u32 %v868_v23, %v766_v24  ;;  %v865_v29 = vld [vmem:[#allocation4 + $0x34] sm:$0xf]  ;;  %v754_v30 = vld [vmem:[#allocation4 + $0x3c] sm:$0xf0]  ;;  %v765_v31 = vor.u32 %v869_v27, %v764_v26  ;;  %s503_s24 = sld [smem:[#allocation3 + %s1078_s28]]  ;;  %v501_v26 = vlaneseq }
  0x20   : > { %v752_v32 = vld [vmem:[#allocation4 + $0x30] sm:$0xf]  ;;  %v866_v33 = vld [vmem:[#allocation4 + $0x38] sm:$0xf0]  ;;  %v757_v34 = vor.u32 %v865_v29, %v754_v30  ;;  %v742_v36 = vld [vmem:[#allocation4 + $0x24] sm:$0xf0] }
  0x21   : > { %441 = vmatpush.bf16.msra.mxu0 %v801_v13  ;;  %s1106_s17 = scalar_select %p258_p6, %s1078_s28, 1  ;;  %v862_v35 = vld [vmem:[#allocation4 + $0x1c] sm:$0xf]  ;;  %v753_v37 = vor.u32 %v866_v33, %v752_v32  ;;  %v740_v38 = vld [vmem:[#allocation4 + $0x18] sm:$0xf]  ;;  %v502_v27 = vand.u32 127, %v501_v26 }
  0x22   : > { %v863_v39 = vld [vmem:[#allocation4 + $0x20] sm:$0xf0]  ;;  %v745_v40 = vor.u32 %v862_v35, %v742_v36  ;;  %v730_v42 = vld [vmem:[#allocation4 + $0xc] sm:$0xf0]  ;;  %v728_v44 = vld [vmem:[#allocation4] sm:$0xf] }
  0x23   : > { %456 = vmatpush.bf16.msra.mxu1 %v793_v16  ;;  %s857_s18 = sshll.u32 %s1106_s17, 4  ;;  %v859_v41 = vld [vmem:[#allocation4 + $0x4] sm:$0xf]  ;;  %v741_v43 = vor.u32 %v863_v39, %v740_v38  ;;  %v860_v45 = vld [vmem:[#allocation4 + $0x8] sm:$0xf0]  ;;  %vm508_vm1 = vcmask 130048  }
  0x24   : > { %s262_s21 = scalar_lea.vmem %s1143_s1, %s857_s18  ;;  %v733_v46 = vor.u32 %v859_v41, %v730_v42  ;;  %v729_v49 = vor.u32 %v860_v45, %v728_v44  ;;  %v820_v51 = vld [vmem:[#allocation4 + $0xb0] sm:$0xf]  ;;  %v882_v52 = vld [vmem:[#allocation4 + $0xb8] sm:$0xf0]  ;;  %v808_v53 = vld [vmem:[#allocation4 + $0x98] sm:$0xf]  ;;  %s267_s29 = scalar_lea.vmem %s1148_s6, %s857_s18 }
  0x25   : > { %442 = vmatpush.bf16.msra.mxu0 %v789_v19  ;;  %v1114_v47 = vld [vmem:[%s262_s21] sm:$0xff]  ;;  %v1116_v48 = vld [vmem:[%s262_s21 + $0x8] sm:$0xff]  ;;  %v821_v54 = vor.u32 %v882_v52, %v820_v51  ;;  %v873_v61 = vld [vmem:[#allocation4 + $0x70] sm:$0xf0] }
  0x26   : > { %v271_v50 = vpack.c.bf16 %v1116_v48, %v1114_v47  ;;  %v879_v55 = vld [vmem:[#allocation4 + $0xa0] sm:$0xf0]  ;;  %v796_v57 = vld [vmem:[#allocation4 + $0x80] sm:$0xf]  ;;  %v876_v58 = vld [vmem:[#allocation4 + $0x88] sm:$0xf0] }
  0x27   : > { %457 = vmatpush.bf16.msra.mxu1 %v781_v22  ;;  %468 = vmatpush.bf16.msra.mxu2 %v821_v54  ;;  %v809_v56 = vor.u32 %v879_v55, %v808_v53  ;;  %v797_v59 = vor.u32 %v876_v58, %v796_v57  ;;  %v784_v60 = vld [vmem:[#allocation4 + $0x68] sm:$0xf]  ;;  %v772_v0 = vld [vmem:[#allocation4 + $0x50] sm:$0xf]  ;;  %v870_v1 = vld [vmem:[#allocation4 + $0x58] sm:$0xf0] }
  0x28   : > { %v785_v62 = vor.u32 %v873_v61, %v784_v60  ;;  %v304_v3 = vld [vmem:[%s1145_s3] sm:$0x7]  ;;  %v773_v4 = vor.u32 %v870_v1, %v772_v0  ;;  %v760_v5 = vld [vmem:[#allocation4 + $0x38] sm:$0xf]  ;;  %v867_v6 = vld [vmem:[#allocation4 + $0x40] sm:$0xf0] }
  0x29   : > { %443 = vmatpush.bf16.msra.mxu0 %v777_v25  ;;  %v307_v7 = vperm.slane %v304_v3, 1  ;;  %v761_v8 = vor.u32 %v867_v6, %v760_v5  ;;  %v306_v9 = vperm.slane %v304_v3, 0  ;;  %v748_v11 = vld [vmem:[#allocation4 + $0x20] sm:$0xf]  ;;  %v864_v12 = vld [vmem:[#allocation4 + $0x28] sm:$0xf0] }
  0x2a   : > { %v749_v18 = vor.u32 %v864_v12, %v748_v11  ;;  %v736_v20 = vld [vmem:[#allocation4 + $0x8] sm:$0xf]  ;;  %v861_v21 = vld [vmem:[#allocation4 + $0x10] sm:$0xf0]  ;;  %v308_v36 = vperm.slane %v304_v3, 2  ;;  %v890_v54 = vld [vmem:[#allocation6 + $0x38] sm:$0xff] }
  0x2b   : > { %458 = vmatpush.bf16.msra.mxu1 %v769_v28  ;;  %469 = vmatpush.bf16.msra.mxu2 %v809_v56  ;;  %v737_v23 = vor.u32 %v861_v21, %v736_v20  ;;  %v504_v28 = vstv %s503_s24  ;;  %v889_v55 = vld [vmem:[#allocation6 + $0x30] sm:$0xff]  ;;  %v888_v56 = vld [vmem:[#allocation6 + $0x28] sm:$0xff]  ;;  %v887_v57 = vld [vmem:[#allocation6 + $0x20] sm:$0xff] }
  0x2c   : > { %vm505_vm0 = vcmp.ge.s32.totalorder %v502_v27, %v504_v28  ;;  %v886_v58 = vld [vmem:[#allocation6 + $0x18] sm:$0xff]  ;;  %v884_v60 = vld [vmem:[#allocation6 + $0x8] sm:$0xff]  ;;  %v883_v61 = vld [vmem:[#allocation6] sm:$0xff] }
  0x2d   : > { %444 = vmatpush.bf16.msra.mxu0 %v765_v31 }
  0x2f   : > { %459 = vmatpush.bf16.msra.mxu1 %v757_v34  ;;  %470 = vmatpush.bf16.msra.mxu2 %v797_v59  ;;  %v885_v59 = vld [vmem:[#allocation6 + $0x10] sm:$0xff] }
  0x31   : > { %445 = vmatpush.bf16.msra.mxu0 %v753_v37 }
  0x33   : > { %460 = vmatpush.bf16.msra.mxu1 %v745_v40  ;;  %471 = vmatpush.bf16.msra.mxu2 %v785_v62 }
  0x35   : > { %446 = vmatpush.bf16.msra.mxu0 %v741_v43 }
  0x37   : > { %461 = vmatpush.bf16.msra.mxu1 %v733_v46  ;;  %472 = vmatpush.bf16.msra.mxu2 %v773_v4 }
  0x39   : > { %447 = vmatpush.bf16.msra.mxu0 %v729_v49 }
  0x3a   : > { %462 = vmatmul.bf16.vlgmr.msra.gmra.mxu1 %v271_v50 }
  0x3b   : > { %473 = vmatpush.bf16.msra.mxu2 %v761_v8 }
  0x3c   : > { %448 = vmatmul.bf16.vlgmr.msra.gmra.mxu0 %v271_v50 }
  0x3f   : > { %474 = vmatpush.bf16.msra.mxu2 %v749_v18 }
  0x43   : > { %475 = vmatpush.bf16.msra.mxu2 %v737_v23 }
  0x46   : > { %476 = vmatmul.bf16.vlgmr.msra.gmra.mxu2 %v271_v50 }
  0xb7   : > { %v463_v63 = vpop.f32.mrf.mxu1 }
  0xb8   : > { %v464_v13 = vadd.f32 %v463_v63, %v307_v7 }
  0xb9   : > { %v449_v2 = vpop.f32.mrf.mxu0 }
  0xba   : > { %v450_v19 = vadd.f32 %v449_v2, %v306_v9 }
  0xbc   : > { %v482_v24 = vmul.f32 0.088388346, %v450_v19 }
  0xbf   : > { %v465_v10 = vpop.f32.mrf.mxu1 }
  0xc0   : > { %v466_v14 = vadd.f32 %v465_v10, %v307_v7  ;;  %v925_v7 = vld [vmem:[%s1147_s5] ss:$0 sm:$0xff] }
  0xc1   : > { %v451_v15 = vpop.f32.mrf.mxu0 }
  0xc2   : > { %v452_v16 = vadd.f32 %v451_v15, %v306_v9  ;;  %v485_v17 = vpack.c.bf16 %v466_v14, %v464_v13 }
  0xc4   : > { %494 = vmatpush.bf16.xpose.msrb.mxu0 %v485_v17  ;;  %v483_v22 = vmul.f32 0.088388346, %v452_v16 }
  0xc6   : > { %v484_v25 = vpack.c.bf16 %v483_v22, %v482_v24 }
  0xc9   : > { %v477_v35 = vpop.f32.mrf.mxu2 }
  0xca   : > { %v478_v37 = vadd.f32 %v477_v35, %v308_v36 }
  0xcb   : > { %495 = vmatmul.bf16.vlgmr.msrb.gmra.mxu0 %v484_v25 }
  0xd1   : > { %v479_v38 = vpop.f32.mrf.mxu2 }
  0xd2   : > { %v480_v39 = vadd.f32 %v479_v38, %v308_v36 }
  0xd4   : > { %v486_v40 = vpack.c.bf16 %v480_v39, %v478_v37 }
  0xd6   : > { %538 = vmatpush.bf16.msra.mxu3 %v486_v40 }
  0xda   : > { %618 = vmatpush.bf16.msrb.mxu3 %v890_v54 }
  0xde   : > { %619 = vmatpush.bf16.msrb.mxu3 %v889_v55 }
  0xe2   : > { %620 = vmatpush.bf16.msrb.mxu3 %v888_v56 }
  0xe6   : > { %621 = vmatpush.bf16.msrb.mxu3 %v887_v57 }
  0xea   : > { %622 = vmatpush.bf16.msrb.mxu3 %v886_v58 }
  0xee   : > { %623 = vmatpush.bf16.msrb.mxu3 %v885_v59 }
  0xf2   : > { %624 = vmatpush.bf16.msrb.mxu3 %v884_v60 }
  0xf6   : > { %625 = vmatpush.bf16.msrb.mxu3 %v883_v61 }
 0x148   : > { %v496_v29 = vpop.f32.mrf.mxu0 }
 0x149   : > { %v506_v30 = vsel %vm505_vm0, -1e+09, %v496_v29 }
 0x14a   : > { %v509_v31 = vsel %vm508_vm1, %v506_v30, -inf }
 0x14b   : > { %510 = vmax.xlane.f32.xlu0 %v509_v31 }
 0x150   : > { %v498_v32 = vpop.f32.mrf.mxu0 }
 0x151   : > { %v507_v33 = vsel %vm505_vm0, -1e+09, %v498_v32 }
 0x152   : > { %v512_v34 = vsel %vm508_vm1, %v507_v33, -inf }
 0x153   : > { %513 = vmax.xlane.f32.xlu0 %v512_v34 }
 0x1be   : > { %v511_v41 = vpop.xlane.xlu0 %510 }
 0x1bf   : > { %v515_v42 = vsub.f32 %v506_v30, %v511_v41 }
 0x1c1   : > { %v517_v43 = vmul.f32 1.442695, %v515_v42 }
 0x1c3   : > { %926 = vpow2.f32 %v517_v43 }
 0x1c6   : > { %v514_v44 = vpop.xlane.xlu0 %513 }
 0x1c7   : > { %v516_v45 = vsub.f32 %v507_v33, %v514_v44 }
 0x1c9   : > { %v927_v46 = vpop.eup %926  ;;  %v519_v49 = vmul.f32 1.442695, %v516_v45 }
 0x1ca   : > { %v521_v50 = vsel %vm508_vm1, %v927_v46, 0.0 }
 0x1cb   : > { %928 = vpow2.f32 %v519_v49  ;;  %522 = vadd.xlane.f32.xlu1 %v521_v50 }
 0x1d1   : > { %v929_v51 = vpop.eup %928 }
 0x1d2   : > { %v524_v52 = vsel %vm508_vm1, %v929_v51, 0.0  ;;  %v527_v53 = vpack.c.bf16 %v929_v51, %v927_v46 }
 0x1d3   : > { %525 = vadd.xlane.f32.xlu1 %v524_v52 }
 0x1d4   : > { %822 = vmatmul.msk.bf16.vlgmr.msra.gmra.mxu3 %vm508_vm1, %v527_v53 }
 0x23e   : > { %v523_v62 = vpop.xlane.xlu1 %522 }
 0x23f   : > { %930 = vrcp.f32 %v523_v62 }
 0x245   : > { %v931_v1 = vpop.eup %930 }
 0x246   : > { %v526_v63 = vpop.xlane.xlu1 %525 }
 0x247   : > { %932 = vrcp.f32 %v526_v63 }
 0x24d   : > { %v933_v2 = vpop.eup %932 }
 0x257   : > { %v540_v0 = vpop.f32.mrf.mxu3 }
 0x258   : > { %v547_v4 = vmul.f32 %v931_v1, %v540_v0 }
 0x25f   : > { %v542_v3 = vpop.f32.mrf.mxu3 }
 0x260   : > { %v548_v5 = vmul.f32 %v933_v2, %v542_v3 }
 0x262   : > { %v549_v6 = vpack.c.bf16 %v548_v5, %v547_v4 }
 0x264   : > { %626 = vmatmul.bf16.vlgmr.msrb.gmra.mxu3 %v549_v6 }
 0x2e7   : > { %v627_v8 = vpop.f32.mrf.mxu3 }
 0x2e8   : > { %v628_v9 = vadd.f32 %v925_v7, %v627_v8 }
 0x2ea   : > { %v632_v10 = vadd.f32 %v628_v9, %v1114_v47 }
 0x2ec   : > { %634 = vst [vmem:[%s267_s29] sm:$0xff] %v632_v10 }
 0x2ef   : > { %v629_v11 = vpop.f32.mrf.mxu3 }
 0x2f0   : > { %v630_v12 = vadd.f32 %v925_v7, %v629_v11 }
 0x2f2   : > { %v633_v13 = vadd.f32 %v630_v12, %v1116_v48 }
 0x2f4   : > { %635 = vst [vmem:[%s267_s29 + $0x8] sm:$0xff] %v633_v13 }
 0x2f5 PF: > { %s26_s25 = sadd.s32 1, %s1022_s25  }
 0x2f6   : > { %p23_p7 = scmp.ge.s32.totalorder %s26_s25, 4  }
 0x2f8   :  { %25 = sbr.rel (!%p23_p7) target bundleno = 8 (0x8), region = 79 }
 0x2fd   :  { %657 = vsyncpa [#allocation5], 1 }
 0x2fe   :  { %659 = vsyncpa [#allocation5 + $0x1], 1 }
 0x2ff   :  { %660 = vsyncpa [#allocation7], 1 }

// kernel: transformer_forward.9
= control target key start
LH: loop header
LB: loop body
LE: loop exit
PB: predicated region body
PF: predicated region fallthrough
CT: control target
= control target key end

     0   :  { %10 = vsyncpa [#allocation3], 0  ;;  %s701_s0 = inlined_call_operand.vmem [shape: f32[32,128], index: 0, kind: input, shape index: {}]   ;;  %s702_s1 = inlined_call_operand.hbm [shape: bf16[128,256], index: 1, kind: input, shape index: {}]   ;;  %s703_s2 = inlined_call_operand.vmem [shape: f32[1,256], index: 2, kind: input, shape index: {}]   ;;  %s704_s3 = inlined_call_operand.hbm [shape: bf16[256,128], index: 3, kind: input, shape index: {}]   ;;  %s705_s4 = inlined_call_operand.vmem [shape: f32[1,128], index: 4, kind: input, shape index: {}]   ;;  %s706_s5 = inlined_call_operand.vmem [shape: f32[32,128], index: 5, kind: output, shape index: {}]  }
   0x1   :  { %s18_s20 = sshll.u32 %s702_s1, 4  ;;  %s19_s20 = int_to_ptr.hbm [resolvable:$true] %s18_s20 }
   0x2   :  { %11 = vsyncpa [#allocation5], 0  ;;  %s613_s21 = smov [#allocation2]   ;;  %s33_s25 = sshll.u32 %s704_s3, 4  ;;  %s34_s25 = int_to_ptr.hbm [resolvable:$true] %s33_s25 }
   0x3   :  { %s20_s22 = sshll.u32 %s613_s21, 4  ;;  %s614_s26 = smov 128   ;;  %s21_s22 = int_to_ptr.vmem [resolvable:$true] %s20_s22 }
   0x4   :  { %s615_s27 = smov 8   ;;  %s616_s28 = smov [#allocation4]  }
   0x5   :  { %26 = dma.hbm_to_vmem [thread:$0]  %s19_s20, 2048, %s21_s22, [#allocation3], %s614_s26, %s614_s26, %s615_s27  }
   0x6   :  { %s35_s29 = sshll.u32 %s616_s28, 4  ;;  %s617_s30 = smov 64   ;;  %s36_s29 = int_to_ptr.vmem [resolvable:$true] %s35_s29 }
   0x7   :  { %s618_s6 = smov 4  }
   0x8   :  { %41 = dma.hbm_to_vmem [thread:$0]  %s34_s25, 2048, %s36_s29, [#allocation5], %s617_s30, %s617_s30, %s618_s6  }
   0x9   :  { %609 = dma.done.wait [#allocation3], 2048  }
   0xa   :  { %610 = vsyncadd [#allocation3], 4294965248 }
   0xb   :  { %611 = dma.done.wait [#allocation5], 2048  }
   0xc   :  { %612 = vsyncadd [#allocation5], 4294965248  ;;  %v452_v0 = vld [vmem:[#allocation2 + $0x70] sm:$0xf]  ;;  %v537_v1 = vld [vmem:[#allocation2 + $0x74] sm:$0xf0] }
   0xd   :  { %v536_v2 = vld [vmem:[#allocation2 + $0x74] sm:$0xf]  ;;  %v453_v3 = vor.u32 %v537_v1, %v452_v0  ;;  %v454_v4 = vld [vmem:[#allocation2 + $0x78] sm:$0xf0]  ;;  %v444_v5 = vld [vmem:[#allocation2 + $0x60] sm:$0xf] }
   0xe   :  { %v535_v6 = vld [vmem:[#allocation2 + $0x64] sm:$0xf0]  ;;  %v457_v7 = vor.u32 %v536_v2, %v454_v4  ;;  %v534_v8 = vld [vmem:[#allocation2 + $0x64] sm:$0xf]  ;;  %v446_v9 = vld [vmem:[#allocation2 + $0x68] sm:$0xf0] }
   0xf   :  { %160 = vmatpush.bf16.msra.mxu0 %v453_v3  ;;  %v445_v10 = vor.u32 %v535_v6, %v444_v5  ;;  %v449_v11 = vor.u32 %v534_v8, %v446_v9  ;;  %v436_v12 = vld [vmem:[#allocation2 + $0x50] sm:$0xf]  ;;  %v533_v13 = vld [vmem:[#allocation2 + $0x54] sm:$0xf0]  ;;  %v532_v14 = vld [vmem:[#allocation2 + $0x54] sm:$0xf] }
  0x10   :  { %179 = vmatpush.bf16.msra.mxu1 %v457_v7  ;;  %v438_v15 = vld [vmem:[#allocation2 + $0x58] sm:$0xf0]  ;;  %v437_v16 = vor.u32 %v533_v13, %v436_v12  ;;  %v428_v18 = vld [vmem:[#allocation2 + $0x40] sm:$0xf]  ;;  %v531_v19 = vld [vmem:[#allocation2 + $0x44] sm:$0xf0] }
  0x11   :  { %v441_v17 = vor.u32 %v532_v14, %v438_v15  ;;  %v530_v20 = vld [vmem:[#allocation2 + $0x44] sm:$0xf]  ;;  %v430_v21 = vld [vmem:[#allocation2 + $0x48] sm:$0xf0]  ;;  %v429_v22 = vor.u32 %v531_v19, %v428_v18  ;;  %v420_v24 = vld [vmem:[#allocation2 + $0x30] sm:$0xf] }
  0x12   :  { %v433_v23 = vor.u32 %v530_v20, %v430_v21  ;;  %v529_v25 = vld [vmem:[#allocation2 + $0x34] sm:$0xf0]  ;;  %v528_v26 = vld [vmem:[#allocation2 + $0x34] sm:$0xf]  ;;  %v422_v27 = vld [vmem:[#allocation2 + $0x38] sm:$0xf0] }
  0x13   :  { %161 = vmatpush.bf16.msra.mxu0 %v445_v10  ;;  %v421_v28 = vor.u32 %v529_v25, %v420_v24  ;;  %v425_v29 = vor.u32 %v528_v26, %v422_v27  ;;  %v412_v30 = vld [vmem:[#allocation2 + $0x20] sm:$0xf]  ;;  %v527_v31 = vld [vmem:[#allocation2 + $0x24] sm:$0xf0]  ;;  %v526_v32 = vld [vmem:[#allocation2 + $0x24] sm:$0xf] }
  0x14   :  { %180 = vmatpush.bf16.msra.mxu1 %v449_v11  ;;  %v414_v33 = vld [vmem:[#allocation2 + $0x28] sm:$0xf0]  ;;  %v413_v34 = vor.u32 %v527_v31, %v412_v30  ;;  %v545_v35 = vld [vmem:[#allocation4 + $0x38] sm:$0xff]  ;;  %v404_v38 = vld [vmem:[#allocation2 + $0x10] sm:$0xf] }
  0x15   :  { %v553_v36 = vld [vmem:[#allocation4 + $0x78] sm:$0xff]  ;;  %v417_v37 = vor.u32 %v526_v32, %v414_v33  ;;  %v524_v40 = vld [vmem:[#allocation2 + $0x14] sm:$0xf]  ;;  %342 = vmatpush.bf16.msra.mxu2 %v545_v35  ;;  %v396_v46 = vld [vmem:[#allocation2] sm:$0xf] }
  0x16   :  { %v525_v39 = vld [vmem:[#allocation2 + $0x14] sm:$0xf0]  ;;  %v406_v41 = vld [vmem:[#allocation2 + $0x18] sm:$0xf0]  ;;  %361 = vmatpush.bf16.msra.mxu3 %v553_v36  ;;  %v544_v42 = vld [vmem:[#allocation4 + $0x30] sm:$0xff] }
  0x17   :  { %162 = vmatpush.bf16.msra.mxu0 %v437_v16  ;;  %v552_v43 = vld [vmem:[#allocation4 + $0x70] sm:$0xff]  ;;  %v405_v44 = vor.u32 %v525_v39, %v404_v38  ;;  %v409_v45 = vor.u32 %v524_v40, %v406_v41  ;;  %v523_v47 = vld [vmem:[#allocation2 + $0x4] sm:$0xf0]  ;;  %v522_v48 = vld [vmem:[#allocation2 + $0x4] sm:$0xf] }
  0x18   :  { %181 = vmatpush.bf16.msra.mxu1 %v441_v17  ;;  %v398_v49 = vld [vmem:[#allocation2 + $0x8] sm:$0xf0]  ;;  %v397_v52 = vor.u32 %v523_v47, %v396_v46  ;;  %v658_v53 = vld [vmem:[%s701_s0] sm:$0xff]  ;;  %v670_v59 = vld [vmem:[%s701_s0 + $0x10] sm:$0xff] }
  0x19   :  { %343 = vmatpush.bf16.msra.mxu2 %v544_v42  ;;  %v543_v50 = vld [vmem:[#allocation4 + $0x28] sm:$0xff]  ;;  %v401_v55 = vor.u32 %v522_v48, %v398_v49  ;;  %v542_v56 = vld [vmem:[#allocation4 + $0x20] sm:$0xff]  ;;  %v675_v60 = vld [vmem:[%s701_s0 + $0x18] sm:$0xff] }
  0x1a   :  { %362 = vmatpush.bf16.msra.mxu3 %v552_v43  ;;  %v551_v51 = vld [vmem:[#allocation4 + $0x68] sm:$0xff]  ;;  %v550_v57 = vld [vmem:[#allocation4 + $0x60] sm:$0xff]  ;;  %v57_v61 = vpack.c.bf16 %v675_v60, %v670_v59  ;;  %v541_v62 = vld [vmem:[#allocation4 + $0x18] sm:$0xff] }
  0x1b   :  { %163 = vmatpush.bf16.msra.mxu0 %v429_v22  ;;  %v663_v54 = vld [vmem:[%s701_s0 + $0x8] sm:$0xff]  ;;  %v549_v63 = vld [vmem:[#allocation4 + $0x58] sm:$0xff]  ;;  %v540_v0 = vld [vmem:[#allocation4 + $0x10] sm:$0xff] }
  0x1c   :  { %182 = vmatpush.bf16.msra.mxu1 %v433_v23  ;;  %v56_v58 = vpack.c.bf16 %v663_v54, %v658_v53  ;;  %v548_v1 = vld [vmem:[#allocation4 + $0x50] sm:$0xff]  ;;  %v539_v2 = vld [vmem:[#allocation4 + $0x8] sm:$0xff]  ;;  %v538_v4 = vld [vmem:[#allocation4] sm:$0xff] }
  0x1d   :  { %344 = vmatpush.bf16.msra.mxu2 %v543_v50  ;;  %v547_v3 = vld [vmem:[#allocation4 + $0x48] sm:$0xff]  ;;  %v546_v5 = vld [vmem:[#allocation4 + $0x40] sm:$0xff] }
  0x1e   :  { %363 = vmatpush.bf16.msra.mxu3 %v551_v51  ;;  %v74_v6 = vld [vmem:[%s703_s2] sm:$0x3] }
  0x1f   :  { %164 = vmatpush.bf16.msra.mxu0 %v421_v28  ;;  %v76_v9 = vperm.slane %v74_v6, 0  ;;  %v77_v10 = vperm.slane %v74_v6, 1 }
  0x20   :  { %183 = vmatpush.bf16.msra.mxu1 %v425_v29 }
  0x21   :  { %345 = vmatpush.bf16.msra.mxu2 %v542_v56 }
  0x22   :  { %364 = vmatpush.bf16.msra.mxu3 %v550_v57 }
  0x23   :  { %165 = vmatpush.bf16.msra.mxu0 %v413_v34 }
  0x24   :  { %184 = vmatpush.bf16.msra.mxu1 %v417_v37  ;;  %v560_v37 = vld [vmem:[%s705_s4] ss:$0 sm:$0xff] }
  0x25   :  { %346 = vmatpush.bf16.msra.mxu2 %v541_v62 }
  0x26   :  { %365 = vmatpush.bf16.msra.mxu3 %v549_v63 }
  0x27   :  { %166 = vmatpush.bf16.msra.mxu0 %v405_v44 }
  0x28   :  { %185 = vmatpush.bf16.msra.mxu1 %v409_v45 }
  0x29   :  { %347 = vmatpush.bf16.msra.mxu2 %v540_v0 }
  0x2a   :  { %366 = vmatpush.bf16.msra.mxu3 %v548_v1 }
  0x2b   :  { %167 = vmatpush.bf16.msra.mxu0 %v397_v52 }
  0x2c   :  { %186 = vmatpush.bf16.msra.mxu1 %v401_v55 }
  0x2d   :  { %348 = vmatpush.bf16.msra.mxu2 %v539_v2 }
  0x2e   :  { %168 = vmatmul.bf16.vlgmr.msra.gmra.mxu0 %v56_v58  ;;  %367 = vmatpush.bf16.msra.mxu3 %v547_v3 }
  0x2f   :  { %187 = vmatmul.bf16.vlgmr.msra.gmra.mxu1 %v56_v58 }
  0x31   :  { %349 = vmatpush.bf16.msra.mxu2 %v538_v4 }
  0x32   :  { %368 = vmatpush.bf16.msra.mxu3 %v546_v5 }
  0x3e   :  { %173 = vmatmul.bf16.gmra.mxu0 %v57_v61 }
  0x3f   :  { %192 = vmatmul.bf16.gmra.mxu1 %v57_v61 }
  0xab   :  { %v169_v7 = vpop.f32.mrf.mxu0 }
  0xac   :  { %v188_v8 = vpop.f32.mrf.mxu1  ;;  %v170_v11 = vadd.f32 %v169_v7, %v76_v9 }
  0xad   :  { %v189_v12 = vadd.f32 %v188_v8, %v77_v10 }
  0xae   :  { %v198_v17 = vmax.f32 %v170_v11, 0.0 }
  0xaf   :  { %v199_v19 = vmax.f32 %v189_v12, 0.0 }
  0xb3   :  { %v171_v13 = vpop.f32.mrf.mxu0 }
  0xb4   :  { %v172_v14 = vadd.f32 %v171_v13, %v76_v9  ;;  %v190_v15 = vpop.f32.mrf.mxu1 }
  0xb5   :  { %v191_v16 = vadd.f32 %v190_v15, %v77_v10 }
  0xb6   :  { %v200_v18 = vmax.f32 %v172_v14, 0.0 }
  0xb7   :  { %v201_v20 = vmax.f32 %v191_v16, 0.0 }
  0xb8   :  { %v206_v21 = vpack.c.bf16 %v200_v18, %v198_v17 }
  0xb9   :  { %v207_v22 = vpack.c.bf16 %v201_v20, %v199_v19 }
  0xba   :  { %350 = vmatmul.bf16.vlgmr.msra.gmra.mxu2 %v206_v21 }
  0xbb   :  { %369 = vmatmul.bf16.vlgmr.msra.gmra.mxu3 %v207_v22  ;;  %v174_v23 = vpop.f32.mrf.mxu0 }
  0xbc   :  { %v193_v24 = vpop.f32.mrf.mxu1  ;;  %v175_v25 = vadd.f32 %v174_v23, %v76_v9 }
  0xbd   :  { %v194_v26 = vadd.f32 %v193_v24, %v77_v10 }
  0xbe   :  { %v202_v31 = vmax.f32 %v175_v25, 0.0 }
  0xbf   :  { %v203_v33 = vmax.f32 %v194_v26, 0.0 }
  0xc3   :  { %v176_v27 = vpop.f32.mrf.mxu0 }
  0xc4   :  { %v177_v28 = vadd.f32 %v176_v27, %v76_v9  ;;  %v195_v29 = vpop.f32.mrf.mxu1 }
  0xc5   :  { %v196_v30 = vadd.f32 %v195_v29, %v77_v10 }
  0xc6   :  { %v204_v32 = vmax.f32 %v177_v28, 0.0 }
  0xc7   :  { %v205_v34 = vmax.f32 %v196_v30, 0.0 }
  0xc8   :  { %v208_v35 = vpack.c.bf16 %v204_v32, %v202_v31 }
  0xc9   :  { %v209_v36 = vpack.c.bf16 %v205_v34, %v203_v33 }
  0xca   :  { %355 = vmatmul.bf16.gmra.mxu2 %v208_v35 }
  0xcb   :  { %374 = vmatmul.bf16.gmra.mxu3 %v209_v36 }
 0x13d   :  { %v351_v38 = vpop.f32.mrf.mxu2 }
 0x13e   :  { %v352_v39 = vadd.f32 %v560_v37, %v351_v38  ;;  %v370_v40 = vpop.f32.mrf.mxu3 }
 0x140   :  { %v371_v41 = vadd.f32 %v370_v40, %v352_v39 }
 0x142   :  { %v380_v42 = vadd.f32 %v371_v41, %v658_v53 }
 0x144   :  { %384 = vst [vmem:[%s706_s5] sm:$0xff] %v380_v42 }
 0x145   :  { %v353_v43 = vpop.f32.mrf.mxu2 }
 0x146   :  { %v354_v44 = vadd.f32 %v560_v37, %v353_v43  ;;  %v372_v45 = vpop.f32.mrf.mxu3 }
 0x148   :  { %v373_v46 = vadd.f32 %v372_v45, %v354_v44 }
 0x14a   :  { %v381_v47 = vadd.f32 %v373_v46, %v663_v54 }
 0x14c   :  { %385 = vst [vmem:[%s706_s5 + $0x8] sm:$0xff] %v381_v47 }
 0x14d   :  { %v356_v48 = vpop.f32.mrf.mxu2 }
 0x14e   :  { %v357_v49 = vadd.f32 %v560_v37, %v356_v48  ;;  %v375_v50 = vpop.f32.mrf.mxu3 }
 0x150   :  { %v376_v51 = vadd.f32 %v375_v50, %v357_v49 }
 0x152   :  { %v382_v52 = vadd.f32 %v376_v51, %v670_v59 }
 0x154   :  { %386 = vst [vmem:[%s706_s5 + $0x10] sm:$0xff] %v382_v52 }
 0x155   :  { %v358_v53 = vpop.f32.mrf.mxu2 }
 0x156   :  { %v359_v55 = vadd.f32 %v560_v37, %v358_v53  ;;  %v377_v56 = vpop.f32.mrf.mxu3 }
 0x158   :  { %v378_v57 = vadd.f32 %v377_v56, %v359_v55 }
 0x15a   :  { %v383_v54 = vadd.f32 %v378_v57, %v675_v60 }
 0x15c   :  { %387 = vst [vmem:[%s706_s5 + $0x18] sm:$0xff] %v383_v54 }
 0x15d   :  { %392 = vsyncpa [#allocation3], 1 }
 0x15e   :  { %393 = vsyncpa [#allocation5], 1 }

// kernel: transformer_forward.10
= control target key start
LH: loop header
LB: loop body
LE: loop exit
PB: predicated region body
PF: predicated region fallthrough
CT: control target
= control target key end

     0   :  { %s916_s24 = smov [#allocation3]   ;;  %s1148_s0 = inlined_call_operand.vmem [shape: s32[2], index: 0, kind: input, shape index: {}]   ;;  %s1149_s1 = inlined_call_operand.vmem [shape: f32[2,8,128], index: 1, kind: input, shape index: {}]   ;;  %s1150_s2 = inlined_call_operand.vmem [shape: bf16[128,384], index: 2, kind: input, shape index: {}]   ;;  %s1151_s3 = inlined_call_operand.vmem [shape: f32[1,384], index: 3, kind: input, shape index: {}]   ;;  %s1152_s4 = inlined_call_operand.hbm [shape: bf16[128,128], index: 4, kind: input, shape index: {}]   ;;  %s1153_s5 = inlined_call_operand.vmem [shape: f32[1,128], index: 5, kind: input, shape index: {}]   ;;  %s1154_s6 = inlined_call_operand.vmem [shape: f32[2,8,128], index: 6, kind: output, shape index: {}]  }
   0x1   :  { %s12_s23 = sshll.u32 %s1148_s0, 4  ;;  %s13_s23 = int_to_ptr.vmem [resolvable:$true] %s12_s23 }
   0x2   :  { %15 = dma.vmem_to_smem %s13_s23, 16, %s916_s24, [#allocation2] }
   0x3   :  { %906 = dma.done.wait [#allocation2], 16 }
   0x4   :  { %907 = vsyncadd [#allocation2], 4294967280 }
   0x5   :  { %18 = sfence }
   0x6   :  { %19 = vsyncpa [#allocation5], 0  ;;  %s958_s25 = smov 0  }
   0x7 LB: > { %s183_s0 = sshll.u32 %s1152_s4, 4  ;;  %s967_s28 = sadd.s32 4294967295, %s914_s25   ;;  %s914_s25 = sphi %s958_s25, %s25_s25   ;;  %s184_s0 = int_to_ptr.hbm [resolvable:$true] %s183_s0 }
   0x8   : > { %p663_p0 = scmp.ge.s32.totalorder %s914_s25, 1  ;;  %p166_p1 = scmp.lt.s32.totalorder %s914_s25, 3 }
   0x9   : > { %p841_p2 = scmp.eq.s32.totalorder %s967_s28, 0  ;;  %s917_s29 = smov [#allocation4]  }
   0xa   : > { %p167_p3 = pnand %p663_p0, %p166_p1  ;;  %s185_s30 = sshll.u32 %s917_s29, 4  ;;  %s186_s30 = int_to_ptr.vmem [resolvable:$true] %s185_s30 }
   0xb   : > { %s918_s7 = smov 64   ;;  %s919_s8 = smov 4  }
   0xc   : > { %p837_p4 = pneg %p167_p3  ;;  %211 = sbr.rel (%p167_p3) target bundleno = 722 (0x2d2), region = 40 }
   0xe   : > { %p838_p5 = pnand %p841_p2, %p837_p4 }
  0x10   : > { %840 = dma.hbm_to_vmem [thread:$0]  (!%p838_p5), %s184_s0, 1024, %s186_s30, [#allocation5], %s918_s7, %s918_s7, %s919_s8  }
  0x11   : > { %909 = dma.done.wait (%p841_p2), [#allocation5], 1024  }
  0x12   : > { %911 = vsyncadd (%p841_p2), [#allocation5], 4294966272  ;;  %v822_v0 = vld [vmem:[%s1150_s2 + $0xac] sm:$0xf]  ;;  %v758_v1 = vld [vmem:[%s1150_s2 + $0xb4] sm:$0xf0] }
  0x13   : > { %v819_v2 = vld [vmem:[%s1150_s2 + $0x94] sm:$0xf]  ;;  %v761_v3 = vor.u32 %v822_v0, %v758_v1  ;;  %v746_v4 = vld [vmem:[%s1150_s2 + $0x9c] sm:$0xf0]  ;;  %v756_v5 = vld [vmem:[%s1150_s2 + $0xa8] sm:$0xf] }
  0x14   : > { %v823_v6 = vld [vmem:[%s1150_s2 + $0xb0] sm:$0xf0]  ;;  %v744_v8 = vld [vmem:[%s1150_s2 + $0x90] sm:$0xf]  ;;  %v749_v9 = vor.u32 %v819_v2, %v746_v4  ;;  %v820_v10 = vld [vmem:[%s1150_s2 + $0x98] sm:$0xf0] }
  0x15   : > { %v757_v7 = vor.u32 %v823_v6, %v756_v5  ;;  %430 = vmatpush.bf16.msra.mxu1 %v761_v3  ;;  %v816_v11 = vld [vmem:[%s1150_s2 + $0x7c] sm:$0xf]  ;;  %v734_v12 = vld [vmem:[%s1150_s2 + $0x84] sm:$0xf0]  ;;  %v745_v13 = vor.u32 %v820_v10, %v744_v8  ;;  %v732_v14 = vld [vmem:[%s1150_s2 + $0x78] sm:$0xf] }
  0x16   : > { %v817_v15 = vld [vmem:[%s1150_s2 + $0x80] sm:$0xf0]  ;;  %v737_v16 = vor.u32 %v816_v11, %v734_v12  ;;  %v722_v18 = vld [vmem:[%s1150_s2 + $0x6c] sm:$0xf0]  ;;  %v720_v20 = vld [vmem:[%s1150_s2 + $0x60] sm:$0xf] }
  0x17   : > { %417 = vmatpush.bf16.msra.mxu0 %v757_v7  ;;  %v813_v17 = vld [vmem:[%s1150_s2 + $0x64] sm:$0xf]  ;;  %v733_v19 = vor.u32 %v817_v15, %v732_v14  ;;  %v814_v21 = vld [vmem:[%s1150_s2 + $0x68] sm:$0xf0]  ;;  %v710_v24 = vld [vmem:[%s1150_s2 + $0x54] sm:$0xf0] }
  0x18   : > { %v725_v22 = vor.u32 %v813_v17, %v722_v18  ;;  %v810_v23 = vld [vmem:[%s1150_s2 + $0x4c] sm:$0xf]  ;;  %v721_v25 = vor.u32 %v814_v21, %v720_v20  ;;  %v708_v26 = vld [vmem:[%s1150_s2 + $0x48] sm:$0xf]  ;;  %v811_v27 = vld [vmem:[%s1150_s2 + $0x50] sm:$0xf0] }
  0x19   : > { %431 = vmatpush.bf16.msra.mxu1 %v749_v9  ;;  %p238_p6 = scmp.lt.s32.totalorder %s967_s28, 1  ;;  %v713_v28 = vor.u32 %v810_v23, %v710_v24  ;;  %v807_v29 = vld [vmem:[%s1150_s2 + $0x34] sm:$0xf]  ;;  %v698_v30 = vld [vmem:[%s1150_s2 + $0x3c] sm:$0xf0]  ;;  %v709_v31 = vor.u32 %v811_v27, %v708_v26  ;;  %vm479_vm1 = vcmask 64512  }
  0x1a   : > { %v696_v32 = vld [vmem:[%s1150_s2 + $0x30] sm:$0xf]  ;;  %v808_v33 = vld [vmem:[%s1150_s2 + $0x38] sm:$0xf0]  ;;  %v701_v34 = vor.u32 %v807_v29, %v698_v30  ;;  %v686_v36 = vld [vmem:[%s1150_s2 + $0x24] sm:$0xf0] }
  0x1b   : > { %418 = vmatpush.bf16.msra.mxu0 %v745_v13  ;;  %s1156_s28 = smov (!%p238_p6, %s967_s28), 1  ;;  %v804_v35 = vld [vmem:[%s1150_s2 + $0x1c] sm:$0xf]  ;;  %v697_v37 = vor.u32 %v808_v33, %v696_v32  ;;  %v684_v38 = vld [vmem:[%s1150_s2 + $0x18] sm:$0xf]  ;;  %vm493_vm2 = vcmask 1043456  }
  0x1c   : > { %v805_v39 = vld [vmem:[%s1150_s2 + $0x20] sm:$0xf0]  ;;  %s668_s19 = sshll.u32 %s1156_s28, 3  ;;  %v689_v40 = vor.u32 %v804_v35, %v686_v36  ;;  %v674_v42 = vld [vmem:[%s1150_s2 + $0xc] sm:$0xf0]  ;;  %v832_v35 = vld [vmem:[#allocation4 + $0x38] sm:$0xff] }
  0x1d   : > { %432 = vmatpush.bf16.msra.mxu1 %v737_v16  ;;  %v801_v41 = vld [vmem:[%s1150_s2 + $0x4] sm:$0xf]  ;;  %v685_v43 = vor.u32 %v805_v39, %v684_v38  ;;  %s241_s27 = scalar_lea.vmem %s1149_s1, %s668_s19  ;;  %v672_v44 = vld [vmem:[%s1150_s2] sm:$0xf]  ;;  %v802_v45 = vld [vmem:[%s1150_s2 + $0x8] sm:$0xf0]  ;;  %s245_s26 = scalar_lea.vmem %s1154_s6, %s668_s19 }
  0x1e   : > { %v677_v46 = vor.u32 %v801_v41, %v674_v42  ;;  %v1078_v47 = vld [vmem:[%s241_s27] sm:$0xff]  ;;  %v673_v48 = vor.u32 %v802_v45, %v672_v44  ;;  %v764_v50 = vld [vmem:[%s1150_s2 + $0xb0] sm:$0xf]  ;;  %v824_v51 = vld [vmem:[%s1150_s2 + $0xb8] sm:$0xf0] }
  0x1f   : > { %419 = vmatpush.bf16.msra.mxu0 %v733_v19  ;;  %v248_v49 = vpack.c.bf16 %v1078_v47, %v1078_v47  ;;  %v752_v52 = vld [vmem:[%s1150_s2 + $0x98] sm:$0xf]  ;;  %v765_v53 = vor.u32 %v824_v51, %v764_v50  ;;  %v821_v54 = vld [vmem:[%s1150_s2 + $0xa0] sm:$0xf0]  ;;  %v740_v56 = vld [vmem:[%s1150_s2 + $0x80] sm:$0xf] }
  0x20   : > { %v753_v55 = vor.u32 %v821_v54, %v752_v52  ;;  %v818_v57 = vld [vmem:[%s1150_s2 + $0x88] sm:$0xf0]  ;;  %v728_v59 = vld [vmem:[%s1150_s2 + $0x68] sm:$0xf]  ;;  %v815_v60 = vld [vmem:[%s1150_s2 + $0x70] sm:$0xf0] }
  0x21   : > { %433 = vmatpush.bf16.msra.mxu1 %v725_v22  ;;  %443 = vmatpush.bf16.msra.mxu2 %v765_v53  ;;  %v741_v58 = vor.u32 %v818_v57, %v740_v56  ;;  %v729_v61 = vor.u32 %v815_v60, %v728_v59  ;;  %v716_v62 = vld [vmem:[%s1150_s2 + $0x50] sm:$0xf]  ;;  %v812_v63 = vld [vmem:[%s1150_s2 + $0x58] sm:$0xf0]  ;;  %v281_v0 = vld [vmem:[%s1151_s3] sm:$0x7]  ;;  %v473_v22 = vlaneseq }
  0x22   : > { %v717_v1 = vor.u32 %v812_v63, %v716_v62  ;;  %v704_v2 = vld [vmem:[%s1150_s2 + $0x38] sm:$0xf]  ;;  %v809_v3 = vld [vmem:[%s1150_s2 + $0x40] sm:$0xf0]  ;;  %v284_v4 = vperm.slane %v281_v0, 1  ;;  %v283_v5 = vperm.slane %v281_v0, 0 }
  0x23   : > { %420 = vmatpush.bf16.msra.mxu0 %v721_v25  ;;  %v705_v6 = vor.u32 %v809_v3, %v704_v2  ;;  %v692_v8 = vld [vmem:[%s1150_s2 + $0x20] sm:$0xf]  ;;  %v806_v9 = vld [vmem:[%s1150_s2 + $0x28] sm:$0xf0]  ;;  %v680_v16 = vld [vmem:[%s1150_s2 + $0x8] sm:$0xf] }
  0x24   : > { %v693_v14 = vor.u32 %v806_v9, %v692_v8  ;;  %v803_v17 = vld [vmem:[%s1150_s2 + $0x10] sm:$0xf0]  ;;  %v474_v23 = vand.u32 127, %v473_v22  ;;  %v476_v24 = vshrl.u32 %v473_v22, 7  ;;  %v285_v30 = vperm.slane %v281_v0, 2  ;;  %v829_v44 = vld [vmem:[#allocation4 + $0x20] sm:$0xff] }
  0x25   : > { %434 = vmatpush.bf16.msra.mxu1 %v713_v28  ;;  %444 = vmatpush.bf16.msra.mxu2 %v753_v55  ;;  %v681_v18 = vor.u32 %v803_v17, %v680_v16  ;;  %v831_v36 = vld [vmem:[#allocation4 + $0x30] sm:$0xff]  ;;  %v828_v45 = vld [vmem:[#allocation4 + $0x18] sm:$0xff]  ;;  %v855_v56 = vld [vmem:[%s1153_s5] ss:$0 sm:$0xff] }
  0x26   : > { %vm477_vm0 = vcmp.gt.s32.totalorder %v474_v23, %v476_v24 }
  0x27   : > { %421 = vmatpush.bf16.msra.mxu0 %v709_v31 }
  0x29   : > { %435 = vmatpush.bf16.msra.mxu1 %v701_v34  ;;  %445 = vmatpush.bf16.msra.mxu2 %v741_v58 }
  0x2b   : > { %422 = vmatpush.bf16.msra.mxu0 %v697_v37  ;;  %v830_v37 = vld [vmem:[#allocation4 + $0x28] sm:$0xff] }
  0x2d   : > { %436 = vmatpush.bf16.msra.mxu1 %v689_v40  ;;  %446 = vmatpush.bf16.msra.mxu2 %v729_v61 }
  0x2f   : > { %423 = vmatpush.bf16.msra.mxu0 %v685_v43 }
  0x31   : > { %437 = vmatpush.bf16.msra.mxu1 %v677_v46  ;;  %447 = vmatpush.bf16.msra.mxu2 %v717_v1  ;;  %v827_v46 = vld [vmem:[#allocation4 + $0x10] sm:$0xff] }
  0x33   : > { %424 = vmatpush.bf16.msra.mxu0 %v673_v48  ;;  %v826_v48 = vld [vmem:[#allocation4 + $0x8] sm:$0xff] }
  0x34   : > { %438 = vmatmul.bf16.vlgmr.msra.gmra.mxu1 %v248_v49 }
  0x35   : > { %448 = vmatpush.bf16.msra.mxu2 %v705_v6 }
  0x36   : > { %425 = vmatmul.bf16.vlgmr.msra.gmra.mxu0 %v248_v49 }
  0x39   : > { %449 = vmatpush.bf16.msra.mxu2 %v693_v14 }
  0x3d   : > { %450 = vmatpush.bf16.msra.mxu2 %v681_v18 }
  0x40   : > { %451 = vmatmul.bf16.vlgmr.msra.gmra.mxu2 %v248_v49  ;;  %v825_v49 = vld [vmem:[#allocation4] sm:$0xff] }
  0xb1   : > { %v439_v7 = vpop.f32.mrf.mxu1 }
  0xb2   : > { %v440_v10 = vadd.f32 %v439_v7, %v284_v4 }
  0xb3   : > { %v426_v11 = vpop.f32.mrf.mxu0 }
  0xb4   : > { %v427_v12 = vadd.f32 %v426_v11, %v283_v5  ;;  %v458_v13 = vpack.c.bf16 %v440_v10, %v440_v10 }
  0xb6   : > { %v456_v15 = vmul.f32 0.088388346, %v427_v12  ;;  %467 = vmatpush.bf16.xpose.msrb.mxu0 %v458_v13 }
  0xb8   : > { %v457_v19 = vpack.c.bf16 %v456_v15, %v456_v15 }
  0xb9   : > { %v441_v20 = vpop.f32.mrf.mxu1 }
  0xbb   : > { %v428_v21 = vpop.f32.mrf.mxu0 }
  0xbd   : > { %468 = vmatmul.bf16.vlgmr.msrb.gmra.mxu0 %v457_v19 }
  0xc3   : > { %v452_v29 = vpop.f32.mrf.mxu2 }
  0xc4   : > { %v453_v32 = vadd.f32 %v452_v29, %v285_v30 }
  0xc6   : > { %v459_v33 = vpack.c.bf16 %v453_v32, %v453_v32 }
  0xc8   : > { %v495_v34 = vsel %vm493_vm2, %v459_v33, 0 }
  0xc9   : > { %504 = vmatpush.bf16.msra.mxu3 %v495_v34 }
  0xcb   : > { %v454_v31 = vpop.f32.mrf.mxu2 }
  0xcd   : > { %581 = vmatpush.bf16.msrb.mxu3 %v832_v35 }
  0xd1   : > { %582 = vmatpush.bf16.msrb.mxu3 %v831_v36 }
  0xd5   : > { %583 = vmatpush.bf16.msrb.mxu3 %v830_v37 }
  0xd9   : > { %584 = vmatpush.bf16.msrb.mxu3 %v829_v44 }
  0xdd   : > { %585 = vmatpush.bf16.msrb.mxu3 %v828_v45 }
  0xe1   : > { %586 = vmatpush.bf16.msrb.mxu3 %v827_v46 }
  0xe5   : > { %587 = vmatpush.bf16.msrb.mxu3 %v826_v48 }
  0xe9   : > { %588 = vmatpush.bf16.msrb.mxu3 %v825_v49 }
 0x13a   : > { %v469_v25 = vpop.f32.mrf.mxu0 }
 0x13b   : > { %v478_v26 = vsel %vm477_vm0, -1e+09, %v469_v25 }
 0x13c   : > { %v480_v27 = vsel %vm479_vm1, %v478_v26, -inf }
 0x13d   : > { %481 = vmax.xlane.f32.xlu0 %v480_v27 }
 0x142   : > { %v471_v28 = vpop.f32.mrf.mxu0 }
 0x1b0   : > { %v482_v38 = vpop.xlane.xlu0 %481 }
 0x1b1   : > { %v483_v39 = vsub.f32 %v478_v26, %v482_v38 }
 0x1b3   : > { %v484_v40 = vmul.f32 1.442695, %v483_v39 }
 0x1b5   : > { %856 = vpow2.f32 %v484_v40 }
 0x1bb   : > { %v857_v41 = vpop.eup %856 }
 0x1bc   : > { %v486_v42 = vsel %vm479_vm1, %v857_v41, 0.0  ;;  %v489_v43 = vpack.c.bf16 %v857_v41, %v857_v41 }
 0x1bd   : > { %487 = vadd.xlane.f32.xlu0 %v486_v42 }
 0x1be   : > { %766 = vmatmul.msk.bf16.vlgmr.msra.gmra.mxu3 %vm479_vm1, %v489_v43 }
 0x230   : > { %v488_v50 = vpop.xlane.xlu0 %487 }
 0x231   : > { %858 = vrcp.f32 %v488_v50 }
 0x237   : > { %v859_v51 = vpop.eup %858 }
 0x241   : > { %v506_v52 = vpop.f32.mrf.mxu3 }
 0x242   : > { %v511_v53 = vmul.f32 %v859_v51, %v506_v52 }
 0x244   : > { %v512_v54 = vpack.c.bf16 %v511_v53, %v511_v53 }
 0x246   : > { %589 = vmatmul.bf16.vlgmr.msrb.gmra.mxu3 %v512_v54 }
 0x249   : > { %v508_v55 = vpop.f32.mrf.mxu3 }
 0x2c9   : > { %v590_v57 = vpop.f32.mrf.mxu3 }
 0x2ca   : > { %v591_v58 = vadd.f32 %v855_v56, %v590_v57 }
 0x2cc   : > { %v594_v59 = vadd.f32 %v591_v58, %v1078_v47 }
 0x2ce   : > { %595 = vst [vmem:[%s245_s26] sm:$0xff] %v594_v59 }
 0x2d1   : > { %v592_v60 = vpop.f32.mrf.mxu3 }
 0x2d2 PF: > { %s25_s25 = sadd.s32 1, %s914_s25  }
 0x2d3   : > { %p22_p7 = scmp.ge.s32.totalorder %s25_s25, 4  }
 0x2d5   :  { %24 = sbr.rel (!%p22_p7) target bundleno = 7 (0x7), region = 75 }
 0x2da   :  { %615 = vsyncpa [#allocation5], 1 }
 0x2db   :  { %617 = vsyncpa [#allocation5 + $0x1], 1 }

// kernel: transformer_forward.13
= control target key start
LH: loop header
LB: loop body
LE: loop exit
PB: predicated region body
PF: predicated region fallthrough
CT: control target
= control target key end

     0   :  { %8 = vsyncpa [#allocation4], 0  ;;  %s397_s0 = inlined_call_operand.vmem [shape: f32[16,128], index: 0, kind: input, shape index: {}]   ;;  %s398_s1 = inlined_call_operand.hbm [shape: bf16[128,256], index: 1, kind: input, shape index: {}]   ;;  %s399_s2 = inlined_call_operand.vmem [shape: f32[1,256], index: 2, kind: input, shape index: {}]   ;;  %s400_s3 = inlined_call_operand.hbm [shape: f32[16,256], index: 3, kind: output, shape index: {}]  }
   0x1   :  { %9 = vsyncpa [#allocation5], 0  ;;  %s16_s14 = sshll.u32 %s398_s1, 4  ;;  %s356_s15 = smov [#allocation3]   ;;  %s17_s14 = int_to_ptr.hbm [resolvable:$true] %s16_s14 }
   0x2   :  { %s18_s16 = sshll.u32 %s356_s15, 4  ;;  %s357_s17 = smov 128   ;;  %s19_s16 = int_to_ptr.vmem [resolvable:$true] %s18_s16 }
   0x3   :  { %s358_s18 = smov 8  }
   0x4   :  { %24 = dma.hbm_to_vmem [thread:$0]  %s17_s14, 2048, %s19_s16, [#allocation4], %s357_s17, %s357_s17, %s358_s18  }
   0x5   :  { %352 = dma.done.wait [#allocation4], 2048  }
   0x6   :  { %353 = vsyncadd [#allocation4], 4294965248  ;;  %v276_v0 = vld [vmem:[#allocation3 + $0x70] sm:$0xf]  ;;  %v297_v1 = vld [vmem:[#allocation3 + $0x74] sm:$0xf0] }
   0x7   :  { %v296_v2 = vld [vmem:[#allocation3 + $0x74] sm:$0xf]  ;;  %v277_v3 = vor.u32 %v297_v1, %v276_v0  ;;  %v278_v4 = vld [vmem:[#allocation3 + $0x78] sm:$0xf0]  ;;  %v268_v5 = vld [vmem:[#allocation3 + $0x60] sm:$0xf] }
   0x8   :  { %v295_v6 = vld [vmem:[#allocation3 + $0x64] sm:$0xf0]  ;;  %v281_v7 = vor.u32 %v296_v2, %v278_v4  ;;  %v294_v8 = vld [vmem:[#allocation3 + $0x64] sm:$0xf]  ;;  %v270_v9 = vld [vmem:[#allocation3 + $0x68] sm:$0xf0] }
   0x9   :  { %142 = vmatpush.bf16.msra.mxu0 %v277_v3  ;;  %v269_v10 = vor.u32 %v295_v6, %v268_v5  ;;  %v273_v11 = vor.u32 %v294_v8, %v270_v9  ;;  %v260_v12 = vld [vmem:[#allocation3 + $0x50] sm:$0xf]  ;;  %v293_v13 = vld [vmem:[#allocation3 + $0x54] sm:$0xf0]  ;;  %v292_v14 = vld [vmem:[#allocation3 + $0x54] sm:$0xf] }
   0xa   :  { %156 = vmatpush.bf16.msra.mxu1 %v281_v7  ;;  %v262_v15 = vld [vmem:[#allocation3 + $0x58] sm:$0xf0]  ;;  %v261_v16 = vor.u32 %v293_v13, %v260_v12  ;;  %v252_v18 = vld [vmem:[#allocation3 + $0x40] sm:$0xf]  ;;  %v291_v19 = vld [vmem:[#allocation3 + $0x44] sm:$0xf0] }
   0xb   :  { %v265_v17 = vor.u32 %v292_v14, %v262_v15  ;;  %v290_v20 = vld [vmem:[#allocation3 + $0x44] sm:$0xf]  ;;  %v254_v21 = vld [vmem:[#allocation3 + $0x48] sm:$0xf0]  ;;  %v253_v22 = vor.u32 %v291_v19, %v252_v18  ;;  %v244_v24 = vld [vmem:[#allocation3 + $0x30] sm:$0xf] }
   0xc   :  { %v257_v23 = vor.u32 %v290_v20, %v254_v21  ;;  %v289_v25 = vld [vmem:[#allocation3 + $0x34] sm:$0xf0]  ;;  %v288_v26 = vld [vmem:[#allocation3 + $0x34] sm:$0xf]  ;;  %v246_v27 = vld [vmem:[#allocation3 + $0x38] sm:$0xf0] }
   0xd   :  { %143 = vmatpush.bf16.msra.mxu0 %v269_v10  ;;  %v245_v28 = vor.u32 %v289_v25, %v244_v24  ;;  %v249_v29 = vor.u32 %v288_v26, %v246_v27  ;;  %v236_v30 = vld [vmem:[#allocation3 + $0x20] sm:$0xf]  ;;  %v287_v31 = vld [vmem:[#allocation3 + $0x24] sm:$0xf0]  ;;  %v286_v32 = vld [vmem:[#allocation3 + $0x24] sm:$0xf] }
   0xe   :  { %157 = vmatpush.bf16.msra.mxu1 %v273_v11  ;;  %v238_v33 = vld [vmem:[#allocation3 + $0x28] sm:$0xf0]  ;;  %v237_v34 = vor.u32 %v287_v31, %v236_v30  ;;  %v228_v36 = vld [vmem:[#allocation3 + $0x10] sm:$0xf]  ;;  %v285_v37 = vld [vmem:[#allocation3 + $0x14] sm:$0xf0] }
   0xf   :  { %v241_v35 = vor.u32 %v286_v32, %v238_v33  ;;  %v284_v38 = vld [vmem:[#allocation3 + $0x14] sm:$0xf]  ;;  %v230_v39 = vld [vmem:[#allocation3 + $0x18] sm:$0xf0]  ;;  %v229_v40 = vor.u32 %v285_v37, %v228_v36  ;;  %v220_v42 = vld [vmem:[#allocation3] sm:$0xf] }
  0x10   :  { %v233_v41 = vor.u32 %v284_v38, %v230_v39  ;;  %v283_v43 = vld [vmem:[#allocation3 + $0x4] sm:$0xf0]  ;;  %v282_v44 = vld [vmem:[#allocation3 + $0x4] sm:$0xf]  ;;  %v222_v45 = vld [vmem:[#allocation3 + $0x8] sm:$0xf0] }
  0x11   :  { %144 = vmatpush.bf16.msra.mxu0 %v261_v16  ;;  %v221_v46 = vor.u32 %v283_v43, %v220_v42  ;;  %v43_v47 = vld [vmem:[%s397_s0] sm:$0xff]  ;;  %v44_v48 = vld [vmem:[%s397_s0 + $0x8] sm:$0xff]  ;;  %v225_v49 = vor.u32 %v282_v44, %v222_v45  ;;  %s359_s0 = smov [#allocation6]   ;;  %s205_s27 = sshll.u32 %s400_s3, 4  ;;  %s206_s27 = int_to_ptr.hbm [resolvable:$true] %s205_s27 }
  0x12   :  { %158 = vmatpush.bf16.msra.mxu1 %v265_v17  ;;  %v45_v50 = vpack.c.bf16 %v44_v48, %v43_v47  ;;  %v185_v51 = vld [vmem:[%s399_s2] sm:$0x3]  ;;  %s203_s24 = sshll.u32 %s359_s0, 4  ;;  %s360_s2 = smov 256   ;;  %s204_s24 = int_to_ptr.vmem [resolvable:$true] %s203_s24 }
  0x13   :  { %v187_v52 = vperm.slane %v185_v51, 0  ;;  %v188_v53 = vperm.slane %v185_v51, 1  ;;  %s361_s28 = smov 16  }
  0x15   :  { %145 = vmatpush.bf16.msra.mxu0 %v253_v22 }
  0x16   :  { %159 = vmatpush.bf16.msra.mxu1 %v257_v23 }
  0x19   :  { %146 = vmatpush.bf16.msra.mxu0 %v245_v28 }
  0x1a   :  { %160 = vmatpush.bf16.msra.mxu1 %v249_v29 }
  0x1d   :  { %147 = vmatpush.bf16.msra.mxu0 %v237_v34 }
  0x1e   :  { %161 = vmatpush.bf16.msra.mxu1 %v241_v35 }
  0x21   :  { %148 = vmatpush.bf16.msra.mxu0 %v229_v40 }
  0x22   :  { %162 = vmatpush.bf16.msra.mxu1 %v233_v41 }
  0x25   :  { %149 = vmatpush.bf16.msra.mxu0 %v221_v46 }
  0x26   :  { %163 = vmatpush.bf16.msra.mxu1 %v225_v49 }
  0x28   :  { %150 = vmatmul.bf16.vlgmr.msra.gmra.mxu0 %v45_v50 }
  0x29   :  { %164 = vmatmul.bf16.vlgmr.msra.gmra.mxu1 %v45_v50 }
  0xa5   :  { %v151_v54 = vpop.f32.mrf.mxu0 }
  0xa6   :  { %v191_v55 = vadd.f32 %v187_v52, %v151_v54  ;;  %v165_v56 = vpop.f32.mrf.mxu1 }
  0xa7   :  { %v192_v57 = vadd.f32 %v188_v53, %v165_v56 }
  0xa8   :  { %195 = vst [vmem:[#allocation6] sm:$0xff] %v191_v55 }
  0xa9   :  { %196 = vst [vmem:[#allocation6 + $0x8] sm:$0xff] %v192_v57 }
  0xad   :  { %v153_v58 = vpop.f32.mrf.mxu0 }
  0xae   :  { %v193_v59 = vadd.f32 %v187_v52, %v153_v58  ;;  %v167_v60 = vpop.f32.mrf.mxu1 }
  0xaf   :  { %v194_v61 = vadd.f32 %v188_v53, %v167_v60 }
  0xb0   :  { %197 = vst [vmem:[#allocation6 + $0x10] sm:$0xff] %v193_v59 }
  0xb1   :  { %198 = vst [vmem:[#allocation6 + $0x18] sm:$0xff] %v194_v61 }
  0xb2   :  { %211 = dma.vmem_to_hbm [thread:$0]  %s204_s24, 512, %s206_s27, [#allocation5], %s360_s2, %s360_s2, %s361_s28  }
  0xb3   :  { %354 = dma.done.wait [#allocation5], 512  }
  0xb4   :  { %355 = vsyncadd [#allocation5], 4294966784 }
  0xb5   :  { %216 = vsyncpa [#allocation4], 1 }
  0xb6   :  { %217 = vsyncpa [#allocation5], 1 }

// kernel: transformer_forward.12
= control target key start
LH: loop header
LB: loop body
LE: loop exit
PB: predicated region body
PF: predicated region fallthrough
CT: control target
= control target key end

     0   :  { %10 = vsyncpa [#allocation3], 0  ;;  %s640_s0 = inlined_call_operand.vmem [shape: f32[16,128], index: 0, kind: input, shape index: {}]   ;;  %s641_s1 = inlined_call_operand.hbm [shape: bf16[128,256], index: 1, kind: input, shape index: {}]   ;;  %s642_s2 = inlined_call_operand.vmem [shape: f32[1,256], index: 2, kind: input, shape index: {}]   ;;  %s643_s3 = inlined_call_operand.hbm [shape: bf16[256,128], index: 3, kind: input, shape index: {}]   ;;  %s644_s4 = inlined_call_operand.vmem [shape: f32[1,128], index: 4, kind: input, shape index: {}]   ;;  %s645_s5 = inlined_call_operand.vmem [shape: f32[16,128], index: 5, kind: output, shape index: {}]  }
   0x1   :  { %s18_s20 = sshll.u32 %s641_s1, 4  ;;  %s19_s20 = int_to_ptr.hbm [resolvable:$true] %s18_s20 }
   0x2   :  { %11 = vsyncpa [#allocation5], 0  ;;  %s580_s21 = smov [#allocation2]   ;;  %s33_s25 = sshll.u32 %s643_s3, 4  ;;  %s34_s25 = int_to_ptr.hbm [resolvable:$true] %s33_s25 }
   0x3   :  { %s20_s22 = sshll.u32 %s580_s21, 4  ;;  %s581_s26 = smov 128   ;;  %s21_s22 = int_to_ptr.vmem [resolvable:$true] %s20_s22 }
   0x4   :  { %s582_s27 = smov 8   ;;  %s583_s28 = smov [#allocation4]  }
   0x5   :  { %26 = dma.hbm_to_vmem [thread:$0]  %s19_s20, 2048, %s21_s22, [#allocation3], %s581_s26, %s581_s26, %s582_s27  }
   0x6   :  { %s35_s29 = sshll.u32 %s583_s28, 4  ;;  %s584_s30 = smov 64   ;;  %s36_s29 = int_to_ptr.vmem [resolvable:$true] %s35_s29 }
   0x7   :  { %s585_s6 = smov 4  }
   0x8   :  { %41 = dma.hbm_to_vmem [thread:$0]  %s34_s25, 2048, %s36_s29, [#allocation5], %s584_s30, %s584_s30, %s585_s6  }
   0x9   :  { %576 = dma.done.wait [#allocation3], 2048  }
   0xa   :  { %577 = vsyncadd [#allocation3], 4294965248 }
   0xb   :  { %578 = dma.done.wait [#allocation5], 2048  }
   0xc   :  { %579 = vsyncadd [#allocation5], 4294965248  ;;  %v419_v0 = vld [vmem:[#allocation2 + $0x70] sm:$0xf]  ;;  %v504_v1 = vld [vmem:[#allocation2 + $0x74] sm:$0xf0] }
   0xd   :  { %v503_v2 = vld [vmem:[#allocation2 + $0x74] sm:$0xf]  ;;  %v420_v3 = vor.u32 %v504_v1, %v419_v0  ;;  %v421_v4 = vld [vmem:[#allocation2 + $0x78] sm:$0xf0]  ;;  %v411_v5 = vld [vmem:[#allocation2 + $0x60] sm:$0xf] }
   0xe   :  { %v502_v6 = vld [vmem:[#allocation2 + $0x64] sm:$0xf0]  ;;  %v424_v7 = vor.u32 %v503_v2, %v421_v4  ;;  %v501_v8 = vld [vmem:[#allocation2 + $0x64] sm:$0xf]  ;;  %v413_v9 = vld [vmem:[#allocation2 + $0x68] sm:$0xf0] }
   0xf   :  { %157 = vmatpush.bf16.msra.mxu0 %v420_v3  ;;  %v412_v10 = vor.u32 %v502_v6, %v411_v5  ;;  %v416_v11 = vor.u32 %v501_v8, %v413_v9  ;;  %v403_v12 = vld [vmem:[#allocation2 + $0x50] sm:$0xf]  ;;  %v500_v13 = vld [vmem:[#allocation2 + $0x54] sm:$0xf0]  ;;  %v499_v14 = vld [vmem:[#allocation2 + $0x54] sm:$0xf] }
  0x10   :  { %171 = vmatpush.bf16.msra.mxu1 %v424_v7  ;;  %v405_v15 = vld [vmem:[#allocation2 + $0x58] sm:$0xf0]  ;;  %v404_v16 = vor.u32 %v500_v13, %v403_v12  ;;  %v395_v18 = vld [vmem:[#allocation2 + $0x40] sm:$0xf]  ;;  %v498_v19 = vld [vmem:[#allocation2 + $0x44] sm:$0xf0] }
  0x11   :  { %v408_v17 = vor.u32 %v499_v14, %v405_v15  ;;  %v497_v20 = vld [vmem:[#allocation2 + $0x44] sm:$0xf]  ;;  %v397_v21 = vld [vmem:[#allocation2 + $0x48] sm:$0xf0]  ;;  %v396_v22 = vor.u32 %v498_v19, %v395_v18  ;;  %v512_v23 = vld [vmem:[#allocation4 + $0x38] sm:$0xff] }
  0x12   :  { %v520_v24 = vld [vmem:[#allocation4 + $0x78] sm:$0xff]  ;;  %v400_v25 = vor.u32 %v497_v20, %v397_v21  ;;  %v387_v26 = vld [vmem:[#allocation2 + $0x30] sm:$0xf]  ;;  %v495_v28 = vld [vmem:[#allocation2 + $0x34] sm:$0xf]  ;;  %323 = vmatpush.bf16.msra.mxu2 %v512_v23 }
  0x13   :  { %158 = vmatpush.bf16.msra.mxu0 %v412_v10  ;;  %v496_v27 = vld [vmem:[#allocation2 + $0x34] sm:$0xf0]  ;;  %v389_v29 = vld [vmem:[#allocation2 + $0x38] sm:$0xf0]  ;;  %337 = vmatpush.bf16.msra.mxu3 %v520_v24  ;;  %v511_v30 = vld [vmem:[#allocation4 + $0x30] sm:$0xff] }
  0x14   :  { %172 = vmatpush.bf16.msra.mxu1 %v416_v11  ;;  %v519_v31 = vld [vmem:[#allocation4 + $0x70] sm:$0xff]  ;;  %v388_v32 = vor.u32 %v496_v27, %v387_v26  ;;  %v392_v33 = vor.u32 %v495_v28, %v389_v29  ;;  %v379_v34 = vld [vmem:[#allocation2 + $0x20] sm:$0xf]  ;;  %v494_v35 = vld [vmem:[#allocation2 + $0x24] sm:$0xf0] }
  0x15   :  { %v493_v36 = vld [vmem:[#allocation2 + $0x24] sm:$0xf]  ;;  %v381_v37 = vld [vmem:[#allocation2 + $0x28] sm:$0xf0]  ;;  %v380_v40 = vor.u32 %v494_v35, %v379_v34  ;;  %v371_v42 = vld [vmem:[#allocation2 + $0x10] sm:$0xf] }
  0x16   :  { %324 = vmatpush.bf16.msra.mxu2 %v511_v30  ;;  %v510_v38 = vld [vmem:[#allocation4 + $0x28] sm:$0xff]  ;;  %v384_v41 = vor.u32 %v493_v36, %v381_v37  ;;  %v492_v43 = vld [vmem:[#allocation2 + $0x14] sm:$0xf0]  ;;  %v491_v44 = vld [vmem:[#allocation2 + $0x14] sm:$0xf] }
  0x17   :  { %159 = vmatpush.bf16.msra.mxu0 %v404_v16  ;;  %338 = vmatpush.bf16.msra.mxu3 %v519_v31  ;;  %v518_v39 = vld [vmem:[#allocation4 + $0x68] sm:$0xff]  ;;  %v373_v45 = vld [vmem:[#allocation2 + $0x18] sm:$0xf0]  ;;  %v509_v46 = vld [vmem:[#allocation4 + $0x20] sm:$0xff]  ;;  %v372_v48 = vor.u32 %v492_v43, %v371_v42 }
  0x18   :  { %173 = vmatpush.bf16.msra.mxu1 %v408_v17  ;;  %v517_v47 = vld [vmem:[#allocation4 + $0x60] sm:$0xff]  ;;  %v376_v49 = vor.u32 %v491_v44, %v373_v45  ;;  %v490_v51 = vld [vmem:[#allocation2 + $0x4] sm:$0xf0]  ;;  %v365_v53 = vld [vmem:[#allocation2 + $0x8] sm:$0xf0] }
  0x19   :  { %v363_v50 = vld [vmem:[#allocation2] sm:$0xf]  ;;  %v489_v52 = vld [vmem:[#allocation2 + $0x4] sm:$0xf]  ;;  %v53_v56 = vld [vmem:[%s640_s0 + $0x8] sm:$0xff] }
  0x1a   :  { %325 = vmatpush.bf16.msra.mxu2 %v510_v38  ;;  %v364_v54 = vor.u32 %v490_v51, %v363_v50  ;;  %v52_v55 = vld [vmem:[%s640_s0] sm:$0xff]  ;;  %v368_v57 = vor.u32 %v489_v52, %v365_v53  ;;  %v508_v59 = vld [vmem:[#allocation4 + $0x18] sm:$0xff]  ;;  %v507_v61 = vld [vmem:[#allocation4 + $0x10] sm:$0xff] }
  0x1b   :  { %160 = vmatpush.bf16.msra.mxu0 %v396_v22  ;;  %339 = vmatpush.bf16.msra.mxu3 %v518_v39  ;;  %v54_v58 = vpack.c.bf16 %v53_v56, %v52_v55  ;;  %v516_v60 = vld [vmem:[#allocation4 + $0x58] sm:$0xff]  ;;  %v515_v62 = vld [vmem:[#allocation4 + $0x50] sm:$0xff]  ;;  %v506_v63 = vld [vmem:[#allocation4 + $0x8] sm:$0xff] }
  0x1c   :  { %174 = vmatpush.bf16.msra.mxu1 %v400_v25  ;;  %v514_v0 = vld [vmem:[#allocation4 + $0x48] sm:$0xff]  ;;  %v505_v1 = vld [vmem:[#allocation4] sm:$0xff] }
  0x1d   :  { %v513_v2 = vld [vmem:[#allocation4 + $0x40] sm:$0xff] }
  0x1e   :  { %326 = vmatpush.bf16.msra.mxu2 %v509_v46  ;;  %v71_v3 = vld [vmem:[%s642_s2] sm:$0x3] }
  0x1f   :  { %161 = vmatpush.bf16.msra.mxu0 %v388_v32  ;;  %340 = vmatpush.bf16.msra.mxu3 %v517_v47  ;;  %v73_v6 = vperm.slane %v71_v3, 0  ;;  %v74_v7 = vperm.slane %v71_v3, 1  ;;  %v527_v20 = vld [vmem:[%s644_s4] ss:$0 sm:$0xff] }
  0x20   :  { %175 = vmatpush.bf16.msra.mxu1 %v392_v33 }
  0x22   :  { %327 = vmatpush.bf16.msra.mxu2 %v508_v59 }
  0x23   :  { %162 = vmatpush.bf16.msra.mxu0 %v380_v40  ;;  %341 = vmatpush.bf16.msra.mxu3 %v516_v60 }
  0x24   :  { %176 = vmatpush.bf16.msra.mxu1 %v384_v41 }
  0x26   :  { %328 = vmatpush.bf16.msra.mxu2 %v507_v61 }
  0x27   :  { %163 = vmatpush.bf16.msra.mxu0 %v372_v48  ;;  %342 = vmatpush.bf16.msra.mxu3 %v515_v62 }
  0x28   :  { %177 = vmatpush.bf16.msra.mxu1 %v376_v49 }
  0x2a   :  { %329 = vmatpush.bf16.msra.mxu2 %v506_v63 }
  0x2b   :  { %164 = vmatpush.bf16.msra.mxu0 %v364_v54  ;;  %343 = vmatpush.bf16.msra.mxu3 %v514_v0 }
  0x2c   :  { %178 = vmatpush.bf16.msra.mxu1 %v368_v57 }
  0x2e   :  { %165 = vmatmul.bf16.vlgmr.msra.gmra.mxu0 %v54_v58  ;;  %330 = vmatpush.bf16.msra.mxu2 %v505_v1 }
  0x2f   :  { %179 = vmatmul.bf16.vlgmr.msra.gmra.mxu1 %v54_v58  ;;  %344 = vmatpush.bf16.msra.mxu3 %v513_v2 }
  0xab   :  { %v166_v4 = vpop.f32.mrf.mxu0 }
  0xac   :  { %v180_v5 = vpop.f32.mrf.mxu1  ;;  %v167_v8 = vadd.f32 %v166_v4, %v73_v6 }
  0xad   :  { %v181_v9 = vadd.f32 %v180_v5, %v74_v7 }
  0xae   :  { %v185_v14 = vmax.f32 %v167_v8, 0.0 }
  0xaf   :  { %v186_v16 = vmax.f32 %v181_v9, 0.0 }
  0xb3   :  { %v168_v10 = vpop.f32.mrf.mxu0 }
  0xb4   :  { %v169_v11 = vadd.f32 %v168_v10, %v73_v6  ;;  %v182_v12 = vpop.f32.mrf.mxu1 }
  0xb5   :  { %v183_v13 = vadd.f32 %v182_v12, %v74_v7 }
  0xb6   :  { %v187_v15 = vmax.f32 %v169_v11, 0.0 }
  0xb7   :  { %v188_v17 = vmax.f32 %v183_v13, 0.0 }
  0xb8   :  { %v189_v18 = vpack.c.bf16 %v187_v15, %v185_v14 }
  0xb9   :  { %v190_v19 = vpack.c.bf16 %v188_v17, %v186_v16 }
  0xba   :  { %331 = vmatmul.bf16.vlgmr.msra.gmra.mxu2 %v189_v18 }
  0xbb   :  { %345 = vmatmul.bf16.vlgmr.msra.gmra.mxu3 %v190_v19 }
 0x13d   :  { %v332_v21 = vpop.f32.mrf.mxu2 }
 0x13e   :  { %v333_v22 = vadd.f32 %v527_v20, %v332_v21  ;;  %v346_v23 = vpop.f32.mrf.mxu3 }
 0x140   :  { %v347_v24 = vadd.f32 %v346_v23, %v333_v22 }
 0x142   :  { %v351_v25 = vadd.f32 %v347_v24, %v52_v55 }
 0x144   :  { %353 = vst [vmem:[%s645_s5] sm:$0xff] %v351_v25 }
 0x145   :  { %v334_v26 = vpop.f32.mrf.mxu2 }
 0x146   :  { %v335_v27 = vadd.f32 %v527_v20, %v334_v26  ;;  %v348_v28 = vpop.f32.mrf.mxu3 }
 0x148   :  { %v349_v29 = vadd.f32 %v348_v28, %v335_v27 }
 0x14a   :  { %v352_v30 = vadd.f32 %v349_v29, %v53_v56 }
 0x14c   :  { %354 = vst [vmem:[%s645_s5 + $0x8] sm:$0xff] %v352_v30 }
 0x14d   :  { %359 = vsyncpa [#allocation3], 1 }
 0x14e   :  { %360 = vsyncpa [#allocation5], 1 }

// kernel: transformer_forward.11
= control target key start
LH: loop header
LB: loop body
LE: loop exit
PB: predicated region body
PF: predicated region fallthrough
CT: control target
= control target key end

     0   :  { %s1178_s12 = smov [#allocation3]   ;;  %s1327_s0 = inlined_call_operand.vmem [shape: s32[2], index: 0, kind: input, shape index: {}]   ;;  %s1328_s1 = inlined_call_operand.vmem [shape: f32[2,8,128], index: 1, kind: input, shape index: {}]   ;;  %s1329_s2 = inlined_call_operand.vmem [shape: f32[2,16,128], index: 2, kind: input, shape index: {}]   ;;  %s1330_s3 = inlined_call_operand.hbm [shape: bf16[128,128], index: 3, kind: input, shape index: {}]   ;;  %s1331_s4 = inlined_call_operand.vmem [shape: f32[1,128], index: 4, kind: input, shape index: {}]   ;;  %s1332_s5 = inlined_call_operand.hbm [shape: bf16[128,256], index: 5, kind: input, shape index: {}]   ;;  %s1333_s6 = inlined_call_operand.vmem [shape: f32[1,256], index: 6, kind: input, shape index: {}]   ;;  %s1334_s7 = inlined_call_operand.hbm [shape: bf16[128,128], index: 7, kind: input, shape index: {}]   ;;  %s1335_s8 = inlined_call_operand.vmem [shape: f32[1,128], index: 8, kind: input, shape index: {}]   ;;  %s1336_s9 = inlined_call_operand.vmem [shape: f32[2,8,128], index: 9, kind: output, shape index: {}]  }
   0x1   :  { %s15_s11 = sshll.u32 %s1327_s0, 4  ;;  %s16_s11 = int_to_ptr.vmem [resolvable:$true] %s15_s11 }
   0x2   :  { %18 = dma.vmem_to_smem %s16_s11, 16, %s1178_s12, [#allocation2] }
   0x3   :  { %1164 = dma.done.wait [#allocation2], 16 }
   0x4   :  { %1165 = vsyncadd [#allocation2], 4294967280 }
   0x5   :  { %21 = sfence }
   0x6   :  { %22 = vsyncpa [#allocation5], 0 }
   0x7   :  { %23 = vsyncpa [#allocation7], 0  ;;  %s1239_s13 = smov 0  }
   0x8 LB: > { %s266_s0 = sshll.u32 %s1332_s5, 4  ;;  %s1248_s16 = sadd.s32 4294967295, %s1176_s13   ;;  %s1176_s13 = sphi %s1239_s13, %s29_s13   ;;  %s267_s0 = int_to_ptr.hbm [resolvable:$true] %s266_s0 }
   0x9   : > { %p831_p0 = scmp.ge.s32.totalorder %s1176_s13, 1  ;;  %p238_p1 = scmp.lt.s32.totalorder %s1176_s13, 3 }
   0xa   : > { %p1030_p2 = scmp.eq.s32.totalorder %s1248_s16, 0  ;;  %s1179_s18 = smov [#allocation6]  }
   0xb   : > { %p1253_p3 = pnand %p831_p0, %p238_p1  ;;  %s268_s19 = sshll.u32 %s1179_s18, 4  ;;  %s269_s19 = int_to_ptr.vmem [resolvable:$true] %s268_s19 }
   0xc   : > { %s249_s22 = sshll.u32 %s1330_s3, 4  ;;  %s1180_s24 = smov [#allocation4]   ;;  %s250_s22 = int_to_ptr.hbm [resolvable:$true] %s249_s22 }
   0xd   : > { %p1020_p4 = pneg %p1253_p3  ;;  %s251_s25 = sshll.u32 %s1180_s24, 4  ;;  %s252_s25 = int_to_ptr.vmem [resolvable:$true] %s251_s25 }
   0xe   : > { %s1181_s26 = smov 128   ;;  %s1182_s27 = smov 8  }
   0xf   : > { %p1264_p5 = pnand %p1030_p2, %p1020_p4  ;;  %s283_s30 = sshll.u32 %s1334_s7, 4  ;;  %s284_s30 = int_to_ptr.hbm [resolvable:$true] %s283_s30 }
  0x10   : > { %s1183_s10 = smov 64   ;;  %s1184_s11 = smov 4  }
  0x11   : > { %1026 = dma.hbm_to_vmem [thread:$0]  (!%p1264_p5), %s267_s0, 2048, %s269_s19, [#allocation7], %s1181_s26, %s1181_s26, %s1182_s27  }
  0x12   : > { %1023 = dma.hbm_to_vmem [thread:$0]  (!%p1264_p5), %s250_s22, 1024, %s252_s25, [#allocation5], %s1183_s10, %s1183_s10, %s1184_s11  }
  0x13   : > { %s1185_s12 = smov [#allocation8]   ;;  %319 = sbr.rel (%p1253_p3) target bundleno = 739 (0x2e3), region = 52 }
  0x14   : > { %s285_s14 = sshll.u32 %s1185_s12, 4  ;;  %s286_s14 = int_to_ptr.vmem [resolvable:$true] %s285_s14 }
  0x15   : > { %1029 = dma.hbm_to_vmem [thread:$0]  (!%p1264_p5), %s284_s30, 1024, %s286_s14, [#allocation7], %s1183_s10, %s1183_s10, %s1184_s11  }
  0x18   : > { %1167 = dma.done.wait (%p1030_p2), [#allocation5], 1024  }
  0x19   : > { %1169 = vsyncadd (%p1030_p2), [#allocation5], 4294966272 }
  0x1a   : > { %1171 = dma.done.wait (%p1030_p2), [#allocation7], 3072  }
  0x1b   : > { %1173 = vsyncadd (%p1030_p2), [#allocation7], 4294964224  ;;  %v934_v0 = vld [vmem:[#allocation6 + $0x70] sm:$0xf]  ;;  %v999_v1 = vld [vmem:[#allocation6 + $0x74] sm:$0xf0] }
  0x1c   : > { %v926_v2 = vld [vmem:[#allocation6 + $0x60] sm:$0xf]  ;;  %v935_v3 = vor.u32 %v999_v1, %v934_v0  ;;  %v997_v4 = vld [vmem:[#allocation6 + $0x64] sm:$0xf0]  ;;  %v983_v5 = vld [vmem:[#allocation4 + $0x38] sm:$0xff]  ;;  %p367_p6 = scmp.lt.s32.totalorder %s1248_s16, 1 }
  0x1d   : > { %v927_v6 = vor.u32 %v997_v4, %v926_v2  ;;  %v918_v7 = vld [vmem:[#allocation6 + $0x50] sm:$0xf]  ;;  %v995_v8 = vld [vmem:[#allocation6 + $0x54] sm:$0xf0]  ;;  %453 = vmatpush.bf16.msra.mxu0 %v983_v5  ;;  %v910_v11 = vld [vmem:[#allocation6 + $0x40] sm:$0xf] }
  0x1e   : > { %569 = vmatpush.bf16.msra.mxu1 %v935_v3  ;;  %v982_v9 = vld [vmem:[#allocation4 + $0x30] sm:$0xff]  ;;  %v919_v10 = vor.u32 %v995_v8, %v918_v7  ;;  %v993_v12 = vld [vmem:[#allocation6 + $0x44] sm:$0xf0]  ;;  %v991_v16 = vld [vmem:[#allocation6 + $0x34] sm:$0xf0]  ;;  %s1289_s15 = scalar_select %p367_p6, %s1248_s16, 1 }
  0x1f   : > { %v981_v13 = vld [vmem:[#allocation4 + $0x28] sm:$0xff]  ;;  %v911_v14 = vor.u32 %v993_v12, %v910_v11  ;;  %v902_v15 = vld [vmem:[#allocation6 + $0x30] sm:$0xf]  ;;  %v980_v17 = vld [vmem:[#allocation4 + $0x20] sm:$0xff]  ;;  %s616_s28 = sld [smem:[#allocation3 + %s1248_s16]]  ;;  %vm620_vm1 = vcmask 130048  }
  0x20   : > { %v903_v18 = vor.u32 %v991_v16, %v902_v15  ;;  %v894_v19 = vld [vmem:[#allocation6 + $0x20] sm:$0xf]  ;;  %v989_v20 = vld [vmem:[#allocation6 + $0x24] sm:$0xf0]  ;;  %v979_v21 = vld [vmem:[#allocation4 + $0x18] sm:$0xff]  ;;  %s975_s0 = sshll.u32 %s1289_s15, 4 }
  0x21   : > { %454 = vmatpush.bf16.msra.mxu0 %v982_v9  ;;  %v895_v22 = vor.u32 %v989_v20, %v894_v19  ;;  %v886_v23 = vld [vmem:[#allocation6 + $0x10] sm:$0xf]  ;;  %v987_v24 = vld [vmem:[#allocation6 + $0x14] sm:$0xf0]  ;;  %s840_s17 = sshll.u32 %s1289_s15, 3  ;;  %s375_s20 = scalar_lea.vmem %s1329_s2, %s975_s0  ;;  %v977_v29 = vld [vmem:[#allocation4 + $0x8] sm:$0xff] }
  0x22   : > { %570 = vmatpush.bf16.msra.mxu1 %v927_v6  ;;  %v978_v25 = vld [vmem:[#allocation4 + $0x10] sm:$0xff]  ;;  %v887_v26 = vor.u32 %v987_v24, %v886_v23  ;;  %v878_v27 = vld [vmem:[#allocation6] sm:$0xf]  ;;  %v985_v28 = vld [vmem:[#allocation6 + $0x4] sm:$0xf0]  ;;  %s370_s23 = scalar_lea.vmem %s1328_s1, %s840_s17  ;;  %s379_s11 = scalar_lea.vmem %s1336_s9, %s840_s17 }
  0x23   : > { %v879_v30 = vor.u32 %v985_v28, %v878_v27  ;;  %v382_v31 = vld [vmem:[%s375_s20] sm:$0xff]  ;;  %v383_v32 = vld [vmem:[%s375_s20 + $0x8] sm:$0xff]  ;;  %v998_v37 = vld [vmem:[#allocation6 + $0x74] sm:$0xf] }
  0x24   : > { %v976_v33 = vld [vmem:[#allocation4] sm:$0xff]  ;;  %v466_v35 = vpack.c.bf16 %v383_v32, %v382_v31  ;;  %v936_v38 = vld [vmem:[#allocation6 + $0x78] sm:$0xf0]  ;;  %v928_v41 = vld [vmem:[#allocation6 + $0x68] sm:$0xf0] }
  0x25   : > { %455 = vmatpush.bf16.msra.mxu0 %v981_v13  ;;  %v1301_v34 = vld [vmem:[%s370_s23] sm:$0xff]  ;;  %v939_v40 = vor.u32 %v998_v37, %v936_v38  ;;  %v994_v43 = vld [vmem:[#allocation6 + $0x54] sm:$0xf]  ;;  %v920_v44 = vld [vmem:[#allocation6 + $0x58] sm:$0xf0]  ;;  %v617_v12 = vstv %s616_s28 }
  0x26   : > { %571 = vmatpush.bf16.msra.mxu1 %v919_v10  ;;  %v384_v36 = vpack.c.bf16 %v1301_v34, %v1301_v34  ;;  %v996_v39 = vld [vmem:[#allocation6 + $0x64] sm:$0xf]  ;;  %v923_v45 = vor.u32 %v994_v43, %v920_v44  ;;  %v912_v47 = vld [vmem:[#allocation6 + $0x48] sm:$0xf0]  ;;  %v990_v50 = vld [vmem:[#allocation6 + $0x34] sm:$0xf]  ;;  %v614_v10 = vlaneseq }
  0x27   : > { %583 = vmatpush.bf16.msra.mxu2 %v939_v40  ;;  %v931_v42 = vor.u32 %v996_v39, %v928_v41  ;;  %v992_v46 = vld [vmem:[#allocation6 + $0x44] sm:$0xf]  ;;  %v904_v51 = vld [vmem:[#allocation6 + $0x38] sm:$0xf0]  ;;  %v483_v53 = vld [vmem:[%s1333_s6] sm:$0x3] }
  0x28   : > { %v915_v48 = vor.u32 %v992_v46, %v912_v47  ;;  %v907_v54 = vor.u32 %v990_v50, %v904_v51  ;;  %v1052_v55 = vld [vmem:[%s1331_s4] ss:$0 sm:$0xff]  ;;  %v988_v56 = vld [vmem:[#allocation6 + $0x24] sm:$0xf]  ;;  %v896_v57 = vld [vmem:[#allocation6 + $0x28] sm:$0xf0] }
  0x29   : > { %456 = vmatpush.bf16.msra.mxu0 %v980_v17  ;;  %v485_v58 = vperm.slane %v483_v53, 0  ;;  %v899_v59 = vor.u32 %v988_v56, %v896_v57  ;;  %v986_v62 = vld [vmem:[#allocation6 + $0x14] sm:$0xf]  ;;  %v888_v63 = vld [vmem:[#allocation6 + $0x18] sm:$0xf0]  ;;  %v615_v11 = vand.u32 127, %v614_v10 }
  0x2a   : > { %572 = vmatpush.bf16.msra.mxu1 %v911_v14  ;;  %v891_v4 = vor.u32 %v986_v62, %v888_v63  ;;  %v984_v6 = vld [vmem:[#allocation6 + $0x4] sm:$0xf]  ;;  %v880_v7 = vld [vmem:[#allocation6 + $0x8] sm:$0xf0]  ;;  %v1007_v23 = vld [vmem:[#allocation8 + $0x38] sm:$0xff] }
  0x2b   : > { %584 = vmatpush.bf16.msra.mxu2 %v931_v42  ;;  %v883_v8 = vor.u32 %v984_v6, %v880_v7  ;;  %vm618_vm0 = vcmp.ge.s32.totalorder %v615_v11, %v617_v12  ;;  %v1006_v24 = vld [vmem:[#allocation8 + $0x30] sm:$0xff]  ;;  %v1004_v32 = vld [vmem:[#allocation8 + $0x20] sm:$0xff] }
  0x2c   : > { %v1000_v37 = vld [vmem:[#allocation8] sm:$0xff] }
  0x2d   : > { %457 = vmatpush.bf16.msra.mxu0 %v979_v21  ;;  %v1053_v44 = vld [vmem:[%s1335_s8] ss:$0 sm:$0xff] }
  0x2e   : > { %573 = vmatpush.bf16.msra.mxu1 %v903_v18  ;;  %v486_v18 = vperm.slane %v483_v53, 1 }
  0x2f   : > { %585 = vmatpush.bf16.msra.mxu2 %v923_v45 }
  0x31   : > { %458 = vmatpush.bf16.msra.mxu0 %v978_v25  ;;  %v1005_v25 = vld [vmem:[#allocation8 + $0x28] sm:$0xff] }
  0x32   : > { %574 = vmatpush.bf16.msra.mxu1 %v895_v22 }
  0x33   : > { %586 = vmatpush.bf16.msra.mxu2 %v915_v48 }
  0x35   : > { %459 = vmatpush.bf16.msra.mxu0 %v977_v29 }
  0x36   : > { %575 = vmatpush.bf16.msra.mxu1 %v887_v26 }
  0x37   : > { %587 = vmatpush.bf16.msra.mxu2 %v907_v54 }
  0x39   : > { %460 = vmatpush.bf16.msra.mxu0 %v976_v33  ;;  %v1003_v33 = vld [vmem:[#allocation8 + $0x18] sm:$0xff] }
  0x3a   : > { %576 = vmatpush.bf16.msra.mxu1 %v879_v30 }
  0x3b   : > { %588 = vmatpush.bf16.msra.mxu2 %v899_v59 }
  0x3c   : > { %461 = vmatmul.bf16.vlgmr.msra.gmra.mxu0 %v384_v36  ;;  %v1001_v36 = vld [vmem:[#allocation8 + $0x8] sm:$0xff] }
  0x3d   : > { %577 = vmatmul.bf16.vlgmr.msra.gmra.mxu1 %v466_v35 }
  0x3f   : > { %589 = vmatpush.bf16.msra.mxu2 %v891_v4 }
  0x43   : > { %590 = vmatpush.bf16.msra.mxu2 %v883_v8 }
  0x46   : > { %591 = vmatmul.bf16.vlgmr.msra.gmra.mxu2 %v466_v35  ;;  %v1002_v35 = vld [vmem:[#allocation8 + $0x10] sm:$0xff] }
  0xb9   : > { %v462_v52 = vpop.f32.mrf.mxu0 }
  0xba   : > { %v578_v49 = vpop.f32.mrf.mxu1  ;;  %v463_v61 = vadd.f32 %v1052_v55, %v462_v52 }
  0xbb   : > { %v579_v0 = vadd.f32 %v578_v49, %v485_v58 }
  0xbc   : > { %v597_v5 = vmul.f32 0.088388346, %v463_v61 }
  0xbe   : > { %v598_v9 = vpack.c.bf16 %v597_v5, %v597_v5 }
  0xc1   : > { %v464_v2 = vpop.f32.mrf.mxu0 }
  0xc2   : > { %v580_v60 = vpop.f32.mrf.mxu1 }
  0xc3   : > { %v581_v1 = vadd.f32 %v580_v60, %v485_v58 }
  0xc5   : > { %v599_v3 = vpack.c.bf16 %v581_v1, %v579_v0 }
  0xc7   : > { %608 = vmatpush.bf16.xpose.msrb.mxu0 %v599_v3 }
  0xc9   : > { %v592_v17 = vpop.f32.mrf.mxu2 }
  0xca   : > { %v593_v19 = vadd.f32 %v592_v17, %v486_v18 }
  0xce   : > { %609 = vmatmul.bf16.vlgmr.msrb.gmra.mxu0 %v598_v9 }
  0xd1   : > { %v594_v20 = vpop.f32.mrf.mxu2 }
  0xd2   : > { %v595_v21 = vadd.f32 %v594_v20, %v486_v18 }
  0xd4   : > { %v600_v22 = vpack.c.bf16 %v595_v21, %v593_v19 }
  0xd6   : > { %641 = vmatpush.bf16.msra.mxu3 %v600_v22 }
  0xda   : > { %718 = vmatpush.bf16.msrb.mxu3 %v1007_v23 }
  0xde   : > { %719 = vmatpush.bf16.msrb.mxu3 %v1006_v24 }
  0xe2   : > { %720 = vmatpush.bf16.msrb.mxu3 %v1005_v25 }
  0xe6   : > { %721 = vmatpush.bf16.msrb.mxu3 %v1004_v32 }
  0xea   : > { %722 = vmatpush.bf16.msrb.mxu3 %v1003_v33 }
  0xee   : > { %723 = vmatpush.bf16.msrb.mxu3 %v1002_v35 }
  0xf2   : > { %724 = vmatpush.bf16.msrb.mxu3 %v1001_v36 }
  0xf6   : > { %725 = vmatpush.bf16.msrb.mxu3 %v1000_v37 }
 0x14b   : > { %v610_v13 = vpop.f32.mrf.mxu0 }
 0x14c   : > { %v619_v14 = vsel %vm618_vm0, -1e+09, %v610_v13 }
 0x14d   : > { %v621_v15 = vsel %vm620_vm1, %v619_v14, -inf }
 0x14e   : > { %622 = vmax.xlane.f32.xlu0 %v621_v15 }
 0x153   : > { %v612_v16 = vpop.f32.mrf.mxu0 }
 0x1c1   : > { %v623_v26 = vpop.xlane.xlu0 %622 }
 0x1c2   : > { %v624_v27 = vsub.f32 %v619_v14, %v623_v26 }
 0x1c4   : > { %v625_v28 = vmul.f32 1.442695, %v624_v27 }
 0x1c6   : > { %1054 = vpow2.f32 %v625_v28 }
 0x1cc   : > { %v1055_v29 = vpop.eup %1054 }
 0x1cd   : > { %v627_v30 = vsel %vm620_vm1, %v1055_v29, 0.0  ;;  %v630_v31 = vpack.c.bf16 %v1055_v29, %v1055_v29 }
 0x1ce   : > { %628 = vadd.xlane.f32.xlu0 %v627_v30 }
 0x1cf   : > { %940 = vmatmul.msk.bf16.vlgmr.msra.gmra.mxu3 %vm620_vm1, %v630_v31 }
 0x241   : > { %v629_v38 = vpop.xlane.xlu0 %628 }
 0x242   : > { %1056 = vrcp.f32 %v629_v38 }
 0x248   : > { %v1057_v39 = vpop.eup %1056 }
 0x252   : > { %v643_v40 = vpop.f32.mrf.mxu3 }
 0x253   : > { %v648_v41 = vmul.f32 %v1057_v39, %v643_v40 }
 0x255   : > { %v649_v42 = vpack.c.bf16 %v648_v41, %v648_v41 }
 0x257   : > { %726 = vmatmul.bf16.vlgmr.msrb.gmra.mxu3 %v649_v42 }
 0x25a   : > { %v645_v43 = vpop.f32.mrf.mxu3 }
 0x2da   : > { %v727_v45 = vpop.f32.mrf.mxu3 }
 0x2db   : > { %v728_v46 = vadd.f32 %v1053_v44, %v727_v45 }
 0x2dd   : > { %v731_v47 = vadd.f32 %v728_v46, %v1301_v34 }
 0x2df   : > { %732 = vst [vmem:[%s379_s11] sm:$0xff] %v731_v47 }
 0x2e2   : > { %v729_v48 = vpop.f32.mrf.mxu3 }
 0x2e3 PF: > { %s29_s13 = sadd.s32 1, %s1176_s13  }
 0x2e4   : > { %p26_p7 = scmp.ge.s32.totalorder %s29_s13, 4  }
 0x2e6   :  { %28 = sbr.rel (!%p26_p7) target bundleno = 8 (0x8), region = 98 }
 0x2eb   :  { %752 = vsyncpa [#allocation5], 1 }
 0x2ec   :  { %754 = vsyncpa [#allocation5 + $0x1], 1 }
 0x2ed   :  { %755 = vsyncpa [#allocation7], 1 }

</bundles_post_ra>
